<compile_context>
chip_gen: v5e
topology: v5e:2x2
jax: 0.10.0
libtpu: 0.0.40
codegen_flags: <defaults>
</compile_context>

<pallas_src>
import functools
import math

import jax
import jax.numpy as jnp
from jax import lax
from jax.experimental import pallas as pl
from jax.experimental.pallas import tpu as pltpu

# -----------------------------------------------------------------------------
# Model config (small, synthetic)
# -----------------------------------------------------------------------------
BATCH = 2
SEQ = 8
HIDDEN = 32
NUM_HEADS = 4
HEAD_DIM = HIDDEN // NUM_HEADS          # 8
INTERMEDIATE = 64
RMS_EPS = 1e-6
ROPE_THETA = 10000.0

_VMEM = pl.BlockSpec(memory_space=pltpu.MemorySpace.VMEM)


# -----------------------------------------------------------------------------
# Fused decoder-layer kernel
# -----------------------------------------------------------------------------
def _rmsnorm_f32(x, w):
    # x: [N, H] f32, w: [1, H] f32
    var = jnp.mean(x * x, axis=-1, keepdims=True)
    return x * lax.rsqrt(var + RMS_EPS) * w


def decoder_layer_kernel(x_ref, ln1_ref, wqkv_ref, wo_ref, ln2_ref,
                         wg_ref, wu_ref, wd_ref, cos_ref, sin_ref, o_ref,
                         *, do_attn, do_mlp):
    x = x_ref[...].astype(jnp.float32)                       # [N, H], N = B*S

    # ---------------- attention block ----------------
    if do_attn:
        xn = _rmsnorm_f32(x, ln1_ref[...].astype(jnp.float32))
        qkv = jnp.dot(xn, wqkv_ref[...],
                      preferred_element_type=jnp.float32)    # [N, 3H]

        cos = cos_ref[...]                                    # [S, D] f32
        sin = sin_ref[...]                                    # [S, D] f32
        scale = 1.0 / math.sqrt(HEAD_DIM)
        row = lax.broadcasted_iota(jnp.int32, (SEQ, SEQ), 0)
        col = lax.broadcasted_iota(jnp.int32, (SEQ, SEQ), 1)
        causal = col <= row
        dh = HEAD_DIM // 2

        def rope(t):                                          # t: [S, D]
            rot = jnp.concatenate([-t[:, dh:], t[:, :dh]], axis=-1)
            return t * cos + rot * sin

        # Fully-unrolled static loop over (batch, head); all slices are static.
        batch_rows = []
        for b in range(BATCH):
            r0 = b * SEQ
            head_cols = []
            for h in range(NUM_HEADS):
                c0 = h * HEAD_DIM
                q = rope(qkv[r0:r0 + SEQ, c0:c0 + HEAD_DIM])
                k = rope(qkv[r0:r0 + SEQ, HIDDEN + c0:HIDDEN + c0 + HEAD_DIM])
                v = qkv[r0:r0 + SEQ, 2 * HIDDEN + c0:2 * HIDDEN + c0 + HEAD_DIM]

                s = jnp.dot(q, k.T, preferred_element_type=jnp.float32) * scale
                s = jnp.where(causal, s, jnp.float32(-1e30))  # causal mask
                m = jnp.max(s, axis=-1, keepdims=True)
                p = jnp.exp(s - m)
                p = p * pl.reciprocal(jnp.sum(p, axis=-1, keepdims=True),
                                      approx=True)
                head_cols.append(
                    jnp.dot(p, v, preferred_element_type=jnp.float32))
            batch_rows.append(jnp.concatenate(head_cols, axis=-1))   # [S, H]
        attn = jnp.concatenate(batch_rows, axis=0)                   # [N, H]

        # o_proj + residual
        x = x + jnp.dot(attn, wo_ref[...], preferred_element_type=jnp.float32)

    # ---------------- MLP block ----------------
    if do_mlp:
        xn = _rmsnorm_f32(x, ln2_ref[...].astype(jnp.float32))
        g = jnp.dot(xn, wg_ref[...], preferred_element_type=jnp.float32)
        u = jnp.dot(xn, wu_ref[...], preferred_element_type=jnp.float32)
        sig = pl.reciprocal(1.0 + jnp.exp(-g), approx=True)           # silu
        hmid = (g * sig) * u
        x = x + jnp.dot(hmid, wd_ref[...], preferred_element_type=jnp.float32)

    o_ref[...] = x.astype(o_ref.dtype)


# -----------------------------------------------------------------------------
# RoPE tables (tiny, computed once in the wrapper, constant-folded under jit)
# -----------------------------------------------------------------------------
def _rope_cos_sin(seq_len, dim):
    inv_freq = 1.0 / (ROPE_THETA ** (jnp.arange(0, dim, 2, dtype=jnp.float32) / dim))
    t = jnp.arange(seq_len, dtype=jnp.float32)
    freqs = t[:, None] * inv_freq[None, :]            # [S, D/2]
    emb = jnp.concatenate([freqs, freqs], axis=-1)    # [S, D]
    return jnp.cos(emb), jnp.sin(emb)


# -----------------------------------------------------------------------------
# Decoder layer forward (mirrors MaskedLlamaDecoderLayer.forward)
# -----------------------------------------------------------------------------
@functools.partial(jax.jit, static_argnames=("mask_block",))
def masked_llama_decoder_layer(hidden_states, params, mask_block=""):
    b, s, h = hidden_states.shape
    do_attn = "mha" not in mask_block
    do_mlp = "mlp" not in mask_block
    if not do_attn and not do_mlp:
        return hidden_states                # both branches masked: passthrough

    cos, sin = _rope_cos_sin(s, HEAD_DIM)
    kernel = functools.partial(decoder_layer_kernel,
                               do_attn=do_attn, do_mlp=do_mlp)
    out2d = pl.pallas_call(
        kernel,
        out_shape=jax.ShapeDtypeStruct((b * s, h), hidden_states.dtype),
        in_specs=[_VMEM] * 10,
        out_specs=_VMEM,
    )(
        hidden_states.reshape(b * s, h),
        params["input_ln_w"].reshape(1, h),
        params["wqkv"],
        params["wo"],
        params["post_ln_w"].reshape(1, h),
        params["wg"],
        params["wu"],
        params["wd"],
        cos,
        sin,
    )
    # TODO(synk): output_attentions / use_cache side outputs not materialized
    #             (module returns them as None / pass-through when False).
    return out2d.reshape(b, s, h)


# -----------------------------------------------------------------------------
# Deterministic parameter init (synthetic weights, no checkpoint)
# -----------------------------------------------------------------------------
def init_params(key):
    ks = jax.random.split(key, 6)
    scale = 0.02
    return {
        "input_ln_w": jnp.ones((HIDDEN,), jnp.float32),
        "post_ln_w": jnp.ones((HIDDEN,), jnp.float32),
        # [in, out] layout (pre-transposed nn.Linear weights)
        "wqkv": scale * jax.random.normal(ks[0], (HIDDEN, 3 * HIDDEN), jnp.float32),
        "wo": scale * jax.random.normal(ks[1], (HIDDEN, HIDDEN), jnp.float32),
        "wg": scale * jax.random.normal(ks[2], (HIDDEN, INTERMEDIATE), jnp.float32),
        "wu": scale * jax.random.normal(ks[3], (HIDDEN, INTERMEDIATE), jnp.float32),
        "wd": scale * jax.random.normal(ks[4], (INTERMEDIATE, HIDDEN), jnp.float32),
    }


if __name__ == "__main__":
    key = jax.random.PRNGKey(0)
    k_x, k_p = jax.random.split(key)
    x = jax.random.normal(k_x, (BATCH, SEQ, HIDDEN), jnp.float32)
    params = init_params(k_p)

    # full layer and both masked branches
    y = jax.block_until_ready(masked_llama_decoder_layer(x, params, mask_block=""))
    y_no_mha = jax.block_until_ready(
        masked_llama_decoder_layer(x, params, mask_block="mha"))
    y_no_mlp = jax.block_until_ready(
        masked_llama_decoder_layer(x, params, mask_block="mlp"))
    y_none = jax.block_until_ready(
        masked_llama_decoder_layer(x, params, mask_block="mha_mlp"))

    assert y.shape == (BATCH, SEQ, HIDDEN)
    assert jnp.all(jnp.isfinite(y))
    assert jnp.all(jnp.isfinite(y_no_mha)) and jnp.all(jnp.isfinite(y_no_mlp))
    assert y_no_mha.shape == y.shape and y_no_mlp.shape == y.shape
    assert jnp.allclose(y_none, x)
    print("KERNEL_OK")
</pallas_src>

<mosaic_0001>
module attributes {stable_mosaic.version = 11 : i64} {
  func.func @decoder_layer_kernel(%arg0: memref<16x32xf32, #tpu.memory_space<vmem>>, %arg1: memref<1x32xf32, #tpu.memory_space<vmem>>, %arg2: memref<32x96xf32, #tpu.memory_space<vmem>>, %arg3: memref<32x32xf32, #tpu.memory_space<vmem>>, %arg4: memref<1x32xf32, #tpu.memory_space<vmem>>, %arg5: memref<32x64xf32, #tpu.memory_space<vmem>>, %arg6: memref<32x64xf32, #tpu.memory_space<vmem>>, %arg7: memref<64x32xf32, #tpu.memory_space<vmem>>, %arg8: memref<8x8xf32, #tpu.memory_space<vmem>>, %arg9: memref<8x8xf32, #tpu.memory_space<vmem>>, %arg10: memref<16x32xf32, #tpu.memory_space<vmem>>) attributes {dimension_semantics = [], scalar_prefetch = 0 : i64, scratch_operands = 0 : i64, tpu.core_type = #tpu.core_type<tc>} {
    %c0 = arith.constant 0 : index
    %c0_0 = arith.constant 0 : index
    %0 = vector.load %arg0[%c0, %c0_0] : memref<16x32xf32, #tpu.memory_space<vmem>>, vector<16x32xf32>
    %c0_1 = arith.constant 0 : index
    %c0_2 = arith.constant 0 : index
    %1 = vector.load %arg1[%c0_1, %c0_2] : memref<1x32xf32, #tpu.memory_space<vmem>>, vector<1x32xf32>
    %2 = arith.mulf %0, %0 : vector<16x32xf32>
    %cst = arith.constant dense<0.000000e+00> : vector<16xf32>
    %3 = vector.multi_reduction <add>, %2, %cst [1] : vector<16x32xf32> to vector<16xf32>
    %4 = vector.shape_cast %3 : vector<16xf32> to vector<16x1xf32>
    %cst_3 = arith.constant 3.200000e+01 : f32
    %5 = vector.broadcast %cst_3 : f32 to vector<16x1xf32>
    %6 = arith.divf %4, %5 : vector<16x1xf32>
    %cst_4 = arith.constant 9.99999997E-7 : f32
    %7 = vector.broadcast %cst_4 : f32 to vector<16x1xf32>
    %8 = arith.addf %6, %7 : vector<16x1xf32>
    %9 = math.rsqrt %8 : vector<16x1xf32>
    %10 = vector.broadcast %9 : vector<16x1xf32> to vector<16x32xf32>
    %11 = arith.mulf %0, %10 : vector<16x32xf32>
    %12 = vector.broadcast %1 : vector<1x32xf32> to vector<16x32xf32>
    %13 = arith.mulf %11, %12 : vector<16x32xf32>
    %c0_5 = arith.constant 0 : index
    %c0_6 = arith.constant 0 : index
    %14 = vector.load %arg2[%c0_5, %c0_6] : memref<32x96xf32, #tpu.memory_space<vmem>>, vector<32x96xf32>
    %cst_7 = arith.constant dense<0.000000e+00> : vector<16x96xf32>
    %15 = tpu.matmul %13, %14, %cst_7 {dimension_numbers = #tpu.dot_dimension_numbers<[1], [0], [0], [1], [0, 0, 1, 1], [], []>} : vector<16x32xf32>, vector<32x96xf32>, vector<16x96xf32> -> vector<16x96xf32>
    %c0_8 = arith.constant 0 : index
    %c0_9 = arith.constant 0 : index
    %16 = vector.load %arg8[%c0_8, %c0_9] : memref<8x8xf32, #tpu.memory_space<vmem>>, vector<8x8xf32>
    %c0_10 = arith.constant 0 : index
    %c0_11 = arith.constant 0 : index
    %17 = vector.load %arg9[%c0_10, %c0_11] : memref<8x8xf32, #tpu.memory_space<vmem>>, vector<8x8xf32>
    %18 = tpu.iota {dimensions = array<i32: 0>} : vector<8x8xi32>
    %19 = tpu.iota {dimensions = array<i32: 1>} : vector<8x8xi32>
    %20 = arith.cmpi sle, %19, %18 : vector<8x8xi32>
    %21 = vector.extract_strided_slice %15 {offsets = [0, 0], sizes = [8, 8], strides = [1, 1]} : vector<16x96xf32> to vector<8x8xf32>
    %22 = vector.extract_strided_slice %21 {offsets = [0, 4], sizes = [8, 4], strides = [1, 1]} : vector<8x8xf32> to vector<8x4xf32>
    %cst_12 = arith.constant 0.000000e+00 : f32
    %23 = vector.broadcast %cst_12 : f32 to vector<8x4xf32>
    %24 = arith.subf %23, %22 : vector<8x4xf32>
    %25 = vector.extract_strided_slice %21 {offsets = [0, 0], sizes = [8, 4], strides = [1, 1]} : vector<8x8xf32> to vector<8x4xf32>
    %26 = tpu.concatenate %24, %25 in 1 : vector<8x4xf32>, vector<8x4xf32> -> vector<8x8xf32>
    %27 = arith.mulf %21, %16 : vector<8x8xf32>
    %28 = arith.mulf %26, %17 : vector<8x8xf32>
    %29 = arith.addf %27, %28 : vector<8x8xf32>
    %30 = vector.extract_strided_slice %15 {offsets = [0, 32], sizes = [8, 8], strides = [1, 1]} : vector<16x96xf32> to vector<8x8xf32>
    %31 = vector.extract_strided_slice %30 {offsets = [0, 4], sizes = [8, 4], strides = [1, 1]} : vector<8x8xf32> to vector<8x4xf32>
    %cst_13 = arith.constant 0.000000e+00 : f32
    %32 = vector.broadcast %cst_13 : f32 to vector<8x4xf32>
    %33 = arith.subf %32, %31 : vector<8x4xf32>
    %34 = vector.extract_strided_slice %30 {offsets = [0, 0], sizes = [8, 4], strides = [1, 1]} : vector<8x8xf32> to vector<8x4xf32>
    %35 = tpu.concatenate %33, %34 in 1 : vector<8x4xf32>, vector<8x4xf32> -> vector<8x8xf32>
    %36 = arith.mulf %30, %16 : vector<8x8xf32>
    %37 = arith.mulf %35, %17 : vector<8x8xf32>
    %38 = arith.addf %36, %37 : vector<8x8xf32>
    %39 = vector.extract_strided_slice %15 {offsets = [0, 64], sizes = [8, 8], strides = [1, 1]} : vector<16x96xf32> to vector<8x8xf32>
    %40 = tpu.transpose %38, [1, 0] : vector<8x8xf32> -> vector<8x8xf32>
    %cst_14 = arith.constant dense<0.000000e+00> : vector<8x8xf32>
    %41 = tpu.matmul %29, %40, %cst_14 {dimension_numbers = #tpu.dot_dimension_numbers<[1], [0], [0], [1], [0, 0, 1, 1], [], []>} : vector<8x8xf32>, vector<8x8xf32>, vector<8x8xf32> -> vector<8x8xf32>
    %cst_15 = arith.constant 0.353553385 : f32
    %42 = vector.broadcast %cst_15 : f32 to vector<8x8xf32>
    %43 = arith.mulf %41, %42 : vector<8x8xf32>
    %cst_16 = arith.constant -1.000000e+30 : f32
    %44 = vector.broadcast %cst_16 : f32 to vector<8x8xf32>
    %45 = arith.select %20, %43, %44 : vector<8x8xi1>, vector<8x8xf32>
    %cst_17 = arith.constant dense<0xFF800000> : vector<8xf32>
    %46 = vector.multi_reduction <maximumf>, %45, %cst_17 [1] : vector<8x8xf32> to vector<8xf32>
    %47 = vector.shape_cast %46 : vector<8xf32> to vector<8x1xf32>
    %48 = vector.broadcast %47 : vector<8x1xf32> to vector<8x8xf32>
    %49 = arith.subf %45, %48 : vector<8x8xf32>
    %50 = math.exp %49 : vector<8x8xf32>
    %cst_18 = arith.constant dense<0.000000e+00> : vector<8xf32>
    %51 = vector.multi_reduction <add>, %50, %cst_18 [1] : vector<8x8xf32> to vector<8xf32>
    %52 = vector.shape_cast %51 : vector<8xf32> to vector<8x1xf32>
    %53 = tpu.reciprocal %52 {approx = true} : vector<8x1xf32> -> vector<8x1xf32>
    %54 = vector.broadcast %53 : vector<8x1xf32> to vector<8x8xf32>
    %55 = arith.mulf %50, %54 : vector<8x8xf32>
    %cst_19 = arith.constant dense<0.000000e+00> : vector<8x8xf32>
    %56 = tpu.matmul %55, %39, %cst_19 {dimension_numbers = #tpu.dot_dimension_numbers<[1], [0], [0], [1], [0, 0, 1, 1], [], []>} : vector<8x8xf32>, vector<8x8xf32>, vector<8x8xf32> -> vector<8x8xf32>
    %57 = vector.extract_strided_slice %15 {offsets = [0, 8], sizes = [8, 8], strides = [1, 1]} : vector<16x96xf32> to vector<8x8xf32>
    %58 = vector.extract_strided_slice %57 {offsets = [0, 4], sizes = [8, 4], strides = [1, 1]} : vector<8x8xf32> to vector<8x4xf32>
    %cst_20 = arith.constant 0.000000e+00 : f32
    %59 = vector.broadcast %cst_20 : f32 to vector<8x4xf32>
    %60 = arith.subf %59, %58 : vector<8x4xf32>
    %61 = vector.extract_strided_slice %57 {offsets = [0, 0], sizes = [8, 4], strides = [1, 1]} : vector<8x8xf32> to vector<8x4xf32>
    %62 = tpu.concatenate %60, %61 in 1 : vector<8x4xf32>, vector<8x4xf32> -> vector<8x8xf32>
    %63 = arith.mulf %57, %16 : vector<8x8xf32>
    %64 = arith.mulf %62, %17 : vector<8x8xf32>
    %65 = arith.addf %63, %64 : vector<8x8xf32>
    %66 = vector.extract_strided_slice %15 {offsets = [0, 40], sizes = [8, 8], strides = [1, 1]} : vector<16x96xf32> to vector<8x8xf32>
    %67 = vector.extract_strided_slice %66 {offsets = [0, 4], sizes = [8, 4], strides = [1, 1]} : vector<8x8xf32> to vector<8x4xf32>
    %cst_21 = arith.constant 0.000000e+00 : f32
    %68 = vector.broadcast %cst_21 : f32 to vector<8x4xf32>
    %69 = arith.subf %68, %67 : vector<8x4xf32>
    %70 = vector.extract_strided_slice %66 {offsets = [0, 0], sizes = [8, 4], strides = [1, 1]} : vector<8x8xf32> to vector<8x4xf32>
    %71 = tpu.concatenate %69, %70 in 1 : vector<8x4xf32>, vector<8x4xf32> -> vector<8x8xf32>
    %72 = arith.mulf %66, %16 : vector<8x8xf32>
    %73 = arith.mulf %71, %17 : vector<8x8xf32>
    %74 = arith.addf %72, %73 : vector<8x8xf32>
    %75 = vector.extract_strided_slice %15 {offsets = [0, 72], sizes = [8, 8], strides = [1, 1]} : vector<16x96xf32> to vector<8x8xf32>
    %76 = tpu.transpose %74, [1, 0] : vector<8x8xf32> -> vector<8x8xf32>
    %cst_22 = arith.constant dense<0.000000e+00> : vector<8x8xf32>
    %77 = tpu.matmul %65, %76, %cst_22 {dimension_numbers = #tpu.dot_dimension_numbers<[1], [0], [0], [1], [0, 0, 1, 1], [], []>} : vector<8x8xf32>, vector<8x8xf32>, vector<8x8xf32> -> vector<8x8xf32>
    %cst_23 = arith.constant 0.353553385 : f32
    %78 = vector.broadcast %cst_23 : f32 to vector<8x8xf32>
    %79 = arith.mulf %77, %78 : vector<8x8xf32>
    %cst_24 = arith.constant -1.000000e+30 : f32
    %80 = vector.broadcast %cst_24 : f32 to vector<8x8xf32>
    %81 = arith.select %20, %79, %80 : vector<8x8xi1>, vector<8x8xf32>
    %cst_25 = arith.constant dense<0xFF800000> : vector<8xf32>
    %82 = vector.multi_reduction <maximumf>, %81, %cst_25 [1] : vector<8x8xf32> to vector<8xf32>
    %83 = vector.shape_cast %82 : vector<8xf32> to vector<8x1xf32>
    %84 = vector.broadcast %83 : vector<8x1xf32> to vector<8x8xf32>
    %85 = arith.subf %81, %84 : vector<8x8xf32>
    %86 = math.exp %85 : vector<8x8xf32>
    %cst_26 = arith.constant dense<0.000000e+00> : vector<8xf32>
    %87 = vector.multi_reduction <add>, %86, %cst_26 [1] : vector<8x8xf32> to vector<8xf32>
    %88 = vector.shape_cast %87 : vector<8xf32> to vector<8x1xf32>
    %89 = tpu.reciprocal %88 {approx = true} : vector<8x1xf32> -> vector<8x1xf32>
    %90 = vector.broadcast %89 : vector<8x1xf32> to vector<8x8xf32>
    %91 = arith.mulf %86, %90 : vector<8x8xf32>
    %cst_27 = arith.constant dense<0.000000e+00> : vector<8x8xf32>
    %92 = tpu.matmul %91, %75, %cst_27 {dimension_numbers = #tpu.dot_dimension_numbers<[1], [0], [0], [1], [0, 0, 1, 1], [], []>} : vector<8x8xf32>, vector<8x8xf32>, vector<8x8xf32> -> vector<8x8xf32>
    %93 = vector.extract_strided_slice %15 {offsets = [0, 16], sizes = [8, 8], strides = [1, 1]} : vector<16x96xf32> to vector<8x8xf32>
    %94 = vector.extract_strided_slice %93 {offsets = [0, 4], sizes = [8, 4], strides = [1, 1]} : vector<8x8xf32> to vector<8x4xf32>
    %cst_28 = arith.constant 0.000000e+00 : f32
    %95 = vector.broadcast %cst_28 : f32 to vector<8x4xf32>
    %96 = arith.subf %95, %94 : vector<8x4xf32>
    %97 = vector.extract_strided_slice %93 {offsets = [0, 0], sizes = [8, 4], strides = [1, 1]} : vector<8x8xf32> to vector<8x4xf32>
    %98 = tpu.concatenate %96, %97 in 1 : vector<8x4xf32>, vector<8x4xf32> -> vector<8x8xf32>
    %99 = arith.mulf %93, %16 : vector<8x8xf32>
    %100 = arith.mulf %98, %17 : vector<8x8xf32>
    %101 = arith.addf %99, %100 : vector<8x8xf32>
    %102 = vector.extract_strided_slice %15 {offsets = [0, 48], sizes = [8, 8], strides = [1, 1]} : vector<16x96xf32> to vector<8x8xf32>
    %103 = vector.extract_strided_slice %102 {offsets = [0, 4], sizes = [8, 4], strides = [1, 1]} : vector<8x8xf32> to vector<8x4xf32>
    %cst_29 = arith.constant 0.000000e+00 : f32
    %104 = vector.broadcast %cst_29 : f32 to vector<8x4xf32>
    %105 = arith.subf %104, %103 : vector<8x4xf32>
    %106 = vector.extract_strided_slice %102 {offsets = [0, 0], sizes = [8, 4], strides = [1, 1]} : vector<8x8xf32> to vector<8x4xf32>
    %107 = tpu.concatenate %105, %106 in 1 : vector<8x4xf32>, vector<8x4xf32> -> vector<8x8xf32>
    %108 = arith.mulf %102, %16 : vector<8x8xf32>
    %109 = arith.mulf %107, %17 : vector<8x8xf32>
    %110 = arith.addf %108, %109 : vector<8x8xf32>
    %111 = vector.extract_strided_slice %15 {offsets = [0, 80], sizes = [8, 8], strides = [1, 1]} : vector<16x96xf32> to vector<8x8xf32>
    %112 = tpu.transpose %110, [1, 0] : vector<8x8xf32> -> vector<8x8xf32>
    %cst_30 = arith.constant dense<0.000000e+00> : vector<8x8xf32>
    %113 = tpu.matmul %101, %112, %cst_30 {dimension_numbers = #tpu.dot_dimension_numbers<[1], [0], [0], [1], [0, 0, 1, 1], [], []>} : vector<8x8xf32>, vector<8x8xf32>, vector<8x8xf32> -> vector<8x8xf32>
    %cst_31 = arith.constant 0.353553385 : f32
    %114 = vector.broadcast %cst_31 : f32 to vector<8x8xf32>
    %115 = arith.mulf %113, %114 : vector<8x8xf32>
    %cst_32 = arith.constant -1.000000e+30 : f32
    %116 = vector.broadcast %cst_32 : f32 to vector<8x8xf32>
    %117 = arith.select %20, %115, %116 : vector<8x8xi1>, vector<8x8xf32>
    %cst_33 = arith.constant dense<0xFF800000> : vector<8xf32>
    %118 = vector.multi_reduction <maximumf>, %117, %cst_33 [1] : vector<8x8xf32> to vector<8xf32>
    %119 = vector.shape_cast %118 : vector<8xf32> to vector<8x1xf32>
    %120 = vector.broadcast %119 : vector<8x1xf32> to vector<8x8xf32>
    %121 = arith.subf %117, %120 : vector<8x8xf32>
    %122 = math.exp %121 : vector<8x8xf32>
    %cst_34 = arith.constant dense<0.000000e+00> : vector<8xf32>
    %123 = vector.multi_reduction <add>, %122, %cst_34 [1] : vector<8x8xf32> to vector<8xf32>
    %124 = vector.shape_cast %123 : vector<8xf32> to vector<8x1xf32>
    %125 = tpu.reciprocal %124 {approx = true} : vector<8x1xf32> -> vector<8x1xf32>
    %126 = vector.broadcast %125 : vector<8x1xf32> to vector<8x8xf32>
    %127 = arith.mulf %122, %126 : vector<8x8xf32>
    %cst_35 = arith.constant dense<0.000000e+00> : vector<8x8xf32>
    %128 = tpu.matmul %127, %111, %cst_35 {dimension_numbers = #tpu.dot_dimension_numbers<[1], [0], [0], [1], [0, 0, 1, 1], [], []>} : vector<8x8xf32>, vector<8x8xf32>, vector<8x8xf32> -> vector<8x8xf32>
    %129 = vector.extract_strided_slice %15 {offsets = [0, 24], sizes = [8, 8], strides = [1, 1]} : vector<16x96xf32> to vector<8x8xf32>
    %130 = vector.extract_strided_slice %129 {offsets = [0, 4], sizes = [8, 4], strides = [1, 1]} : vector<8x8xf32> to vector<8x4xf32>
    %cst_36 = arith.constant 0.000000e+00 : f32
    %131 = vector.broadcast %cst_36 : f32 to vector<8x4xf32>
    %132 = arith.subf %131, %130 : vector<8x4xf32>
    %133 = vector.extract_strided_slice %129 {offsets = [0, 0], sizes = [8, 4], strides = [1, 1]} : vector<8x8xf32> to vector<8x4xf32>
    %134 = tpu.concatenate %132, %133 in 1 : vector<8x4xf32>, vector<8x4xf32> -> vector<8x8xf32>
    %135 = arith.mulf %129, %16 : vector<8x8xf32>
    %136 = arith.mulf %134, %17 : vector<8x8xf32>
    %137 = arith.addf %135, %136 : vector<8x8xf32>
    %138 = vector.extract_strided_slice %15 {offsets = [0, 56], sizes = [8, 8], strides = [1, 1]} : vector<16x96xf32> to vector<8x8xf32>
    %139 = vector.extract_strided_slice %138 {offsets = [0, 4], sizes = [8, 4], strides = [1, 1]} : vector<8x8xf32> to vector<8x4xf32>
    %cst_37 = arith.constant 0.000000e+00 : f32
    %140 = vector.broadcast %cst_37 : f32 to vector<8x4xf32>
    %141 = arith.subf %140, %139 : vector<8x4xf32>
    %142 = vector.extract_strided_slice %138 {offsets = [0, 0], sizes = [8, 4], strides = [1, 1]} : vector<8x8xf32> to vector<8x4xf32>
    %143 = tpu.concatenate %141, %142 in 1 : vector<8x4xf32>, vector<8x4xf32> -> vector<8x8xf32>
    %144 = arith.mulf %138, %16 : vector<8x8xf32>
    %145 = arith.mulf %143, %17 : vector<8x8xf32>
    %146 = arith.addf %144, %145 : vector<8x8xf32>
    %147 = vector.extract_strided_slice %15 {offsets = [0, 88], sizes = [8, 8], strides = [1, 1]} : vector<16x96xf32> to vector<8x8xf32>
    %148 = tpu.transpose %146, [1, 0] : vector<8x8xf32> -> vector<8x8xf32>
    %cst_38 = arith.constant dense<0.000000e+00> : vector<8x8xf32>
    %149 = tpu.matmul %137, %148, %cst_38 {dimension_numbers = #tpu.dot_dimension_numbers<[1], [0], [0], [1], [0, 0, 1, 1], [], []>} : vector<8x8xf32>, vector<8x8xf32>, vector<8x8xf32> -> vector<8x8xf32>
    %cst_39 = arith.constant 0.353553385 : f32
    %150 = vector.broadcast %cst_39 : f32 to vector<8x8xf32>
    %151 = arith.mulf %149, %150 : vector<8x8xf32>
    %cst_40 = arith.constant -1.000000e+30 : f32
    %152 = vector.broadcast %cst_40 : f32 to vector<8x8xf32>
    %153 = arith.select %20, %151, %152 : vector<8x8xi1>, vector<8x8xf32>
    %cst_41 = arith.constant dense<0xFF800000> : vector<8xf32>
    %154 = vector.multi_reduction <maximumf>, %153, %cst_41 [1] : vector<8x8xf32> to vector<8xf32>
    %155 = vector.shape_cast %154 : vector<8xf32> to vector<8x1xf32>
    %156 = vector.broadcast %155 : vector<8x1xf32> to vector<8x8xf32>
    %157 = arith.subf %153, %156 : vector<8x8xf32>
    %158 = math.exp %157 : vector<8x8xf32>
    %cst_42 = arith.constant dense<0.000000e+00> : vector<8xf32>
    %159 = vector.multi_reduction <add>, %158, %cst_42 [1] : vector<8x8xf32> to vector<8xf32>
    %160 = vector.shape_cast %159 : vector<8xf32> to vector<8x1xf32>
    %161 = tpu.reciprocal %160 {approx = true} : vector<8x1xf32> -> vector<8x1xf32>
    %162 = vector.broadcast %161 : vector<8x1xf32> to vector<8x8xf32>
    %163 = arith.mulf %158, %162 : vector<8x8xf32>
    %cst_43 = arith.constant dense<0.000000e+00> : vector<8x8xf32>
    %164 = tpu.matmul %163, %147, %cst_43 {dimension_numbers = #tpu.dot_dimension_numbers<[1], [0], [0], [1], [0, 0, 1, 1], [], []>} : vector<8x8xf32>, vector<8x8xf32>, vector<8x8xf32> -> vector<8x8xf32>
    %165 = tpu.concatenate %56, %92, %128, %164 in 1 : vector<8x8xf32>, vector<8x8xf32>, vector<8x8xf32>, vector<8x8xf32> -> vector<8x32xf32>
    %166 = vector.extract_strided_slice %15 {offsets = [8, 0], sizes = [8, 8], strides = [1, 1]} : vector<16x96xf32> to vector<8x8xf32>
    %167 = vector.extract_strided_slice %166 {offsets = [0, 4], sizes = [8, 4], strides = [1, 1]} : vector<8x8xf32> to vector<8x4xf32>
    %cst_44 = arith.constant 0.000000e+00 : f32
    %168 = vector.broadcast %cst_44 : f32 to vector<8x4xf32>
    %169 = arith.subf %168, %167 : vector<8x4xf32>
    %170 = vector.extract_strided_slice %166 {offsets = [0, 0], sizes = [8, 4], strides = [1, 1]} : vector<8x8xf32> to vector<8x4xf32>
    %171 = tpu.concatenate %169, %170 in 1 : vector<8x4xf32>, vector<8x4xf32> -> vector<8x8xf32>
    %172 = arith.mulf %166, %16 : vector<8x8xf32>
    %173 = arith.mulf %171, %17 : vector<8x8xf32>
    %174 = arith.addf %172, %173 : vector<8x8xf32>
    %175 = vector.extract_strided_slice %15 {offsets = [8, 32], sizes = [8, 8], strides = [1, 1]} : vector<16x96xf32> to vector<8x8xf32>
    %176 = vector.extract_strided_slice %175 {offsets = [0, 4], sizes = [8, 4], strides = [1, 1]} : vector<8x8xf32> to vector<8x4xf32>
    %cst_45 = arith.constant 0.000000e+00 : f32
    %177 = vector.broadcast %cst_45 : f32 to vector<8x4xf32>
    %178 = arith.subf %177, %176 : vector<8x4xf32>
    %179 = vector.extract_strided_slice %175 {offsets = [0, 0], sizes = [8, 4], strides = [1, 1]} : vector<8x8xf32> to vector<8x4xf32>
    %180 = tpu.concatenate %178, %179 in 1 : vector<8x4xf32>, vector<8x4xf32> -> vector<8x8xf32>
    %181 = arith.mulf %175, %16 : vector<8x8xf32>
    %182 = arith.mulf %180, %17 : vector<8x8xf32>
    %183 = arith.addf %181, %182 : vector<8x8xf32>
    %184 = vector.extract_strided_slice %15 {offsets = [8, 64], sizes = [8, 8], strides = [1, 1]} : vector<16x96xf32> to vector<8x8xf32>
    %185 = tpu.transpose %183, [1, 0] : vector<8x8xf32> -> vector<8x8xf32>
    %cst_46 = arith.constant dense<0.000000e+00> : vector<8x8xf32>
    %186 = tpu.matmul %174, %185, %cst_46 {dimension_numbers = #tpu.dot_dimension_numbers<[1], [0], [0], [1], [0, 0, 1, 1], [], []>} : vector<8x8xf32>, vector<8x8xf32>, vector<8x8xf32> -> vector<8x8xf32>
    %cst_47 = arith.constant 0.353553385 : f32
    %187 = vector.broadcast %cst_47 : f32 to vector<8x8xf32>
    %188 = arith.mulf %186, %187 : vector<8x8xf32>
    %cst_48 = arith.constant -1.000000e+30 : f32
    %189 = vector.broadcast %cst_48 : f32 to vector<8x8xf32>
    %190 = arith.select %20, %188, %189 : vector<8x8xi1>, vector<8x8xf32>
    %cst_49 = arith.constant dense<0xFF800000> : vector<8xf32>
    %191 = vector.multi_reduction <maximumf>, %190, %cst_49 [1] : vector<8x8xf32> to vector<8xf32>
    %192 = vector.shape_cast %191 : vector<8xf32> to vector<8x1xf32>
    %193 = vector.broadcast %192 : vector<8x1xf32> to vector<8x8xf32>
    %194 = arith.subf %190, %193 : vector<8x8xf32>
    %195 = math.exp %194 : vector<8x8xf32>
    %cst_50 = arith.constant dense<0.000000e+00> : vector<8xf32>
    %196 = vector.multi_reduction <add>, %195, %cst_50 [1] : vector<8x8xf32> to vector<8xf32>
    %197 = vector.shape_cast %196 : vector<8xf32> to vector<8x1xf32>
    %198 = tpu.reciprocal %197 {approx = true} : vector<8x1xf32> -> vector<8x1xf32>
    %199 = vector.broadcast %198 : vector<8x1xf32> to vector<8x8xf32>
    %200 = arith.mulf %195, %199 : vector<8x8xf32>
    %cst_51 = arith.constant dense<0.000000e+00> : vector<8x8xf32>
    %201 = tpu.matmul %200, %184, %cst_51 {dimension_numbers = #tpu.dot_dimension_numbers<[1], [0], [0], [1], [0, 0, 1, 1], [], []>} : vector<8x8xf32>, vector<8x8xf32>, vector<8x8xf32> -> vector<8x8xf32>
    %202 = vector.extract_strided_slice %15 {offsets = [8, 8], sizes = [8, 8], strides = [1, 1]} : vector<16x96xf32> to vector<8x8xf32>
    %203 = vector.extract_strided_slice %202 {offsets = [0, 4], sizes = [8, 4], strides = [1, 1]} : vector<8x8xf32> to vector<8x4xf32>
    %cst_52 = arith.constant 0.000000e+00 : f32
    %204 = vector.broadcast %cst_52 : f32 to vector<8x4xf32>
    %205 = arith.subf %204, %203 : vector<8x4xf32>
    %206 = vector.extract_strided_slice %202 {offsets = [0, 0], sizes = [8, 4], strides = [1, 1]} : vector<8x8xf32> to vector<8x4xf32>
    %207 = tpu.concatenate %205, %206 in 1 : vector<8x4xf32>, vector<8x4xf32> -> vector<8x8xf32>
    %208 = arith.mulf %202, %16 : vector<8x8xf32>
    %209 = arith.mulf %207, %17 : vector<8x8xf32>
    %210 = arith.addf %208, %209 : vector<8x8xf32>
    %211 = vector.extract_strided_slice %15 {offsets = [8, 40], sizes = [8, 8], strides = [1, 1]} : vector<16x96xf32> to vector<8x8xf32>
    %212 = vector.extract_strided_slice %211 {offsets = [0, 4], sizes = [8, 4], strides = [1, 1]} : vector<8x8xf32> to vector<8x4xf32>
    %cst_53 = arith.constant 0.000000e+00 : f32
    %213 = vector.broadcast %cst_53 : f32 to vector<8x4xf32>
    %214 = arith.subf %213, %212 : vector<8x4xf32>
    %215 = vector.extract_strided_slice %211 {offsets = [0, 0], sizes = [8, 4], strides = [1, 1]} : vector<8x8xf32> to vector<8x4xf32>
    %216 = tpu.concatenate %214, %215 in 1 : vector<8x4xf32>, vector<8x4xf32> -> vector<8x8xf32>
    %217 = arith.mulf %211, %16 : vector<8x8xf32>
    %218 = arith.mulf %216, %17 : vector<8x8xf32>
    %219 = arith.addf %217, %218 : vector<8x8xf32>
    %220 = vector.extract_strided_slice %15 {offsets = [8, 72], sizes = [8, 8], strides = [1, 1]} : vector<16x96xf32> to vector<8x8xf32>
    %221 = tpu.transpose %219, [1, 0] : vector<8x8xf32> -> vector<8x8xf32>
    %cst_54 = arith.constant dense<0.000000e+00> : vector<8x8xf32>
    %222 = tpu.matmul %210, %221, %cst_54 {dimension_numbers = #tpu.dot_dimension_numbers<[1], [0], [0], [1], [0, 0, 1, 1], [], []>} : vector<8x8xf32>, vector<8x8xf32>, vector<8x8xf32> -> vector<8x8xf32>
    %cst_55 = arith.constant 0.353553385 : f32
    %223 = vector.broadcast %cst_55 : f32 to vector<8x8xf32>
    %224 = arith.mulf %222, %223 : vector<8x8xf32>
    %cst_56 = arith.constant -1.000000e+30 : f32
    %225 = vector.broadcast %cst_56 : f32 to vector<8x8xf32>
    %226 = arith.select %20, %224, %225 : vector<8x8xi1>, vector<8x8xf32>
    %cst_57 = arith.constant dense<0xFF800000> : vector<8xf32>
    %227 = vector.multi_reduction <maximumf>, %226, %cst_57 [1] : vector<8x8xf32> to vector<8xf32>
    %228 = vector.shape_cast %227 : vector<8xf32> to vector<8x1xf32>
    %229 = vector.broadcast %228 : vector<8x1xf32> to vector<8x8xf32>
    %230 = arith.subf %226, %229 : vector<8x8xf32>
    %231 = math.exp %230 : vector<8x8xf32>
    %cst_58 = arith.constant dense<0.000000e+00> : vector<8xf32>
    %232 = vector.multi_reduction <add>, %231, %cst_58 [1] : vector<8x8xf32> to vector<8xf32>
    %233 = vector.shape_cast %232 : vector<8xf32> to vector<8x1xf32>
    %234 = tpu.reciprocal %233 {approx = true} : vector<8x1xf32> -> vector<8x1xf32>
    %235 = vector.broadcast %234 : vector<8x1xf32> to vector<8x8xf32>
    %236 = arith.mulf %231, %235 : vector<8x8xf32>
    %cst_59 = arith.constant dense<0.000000e+00> : vector<8x8xf32>
    %237 = tpu.matmul %236, %220, %cst_59 {dimension_numbers = #tpu.dot_dimension_numbers<[1], [0], [0], [1], [0, 0, 1, 1], [], []>} : vector<8x8xf32>, vector<8x8xf32>, vector<8x8xf32> -> vector<8x8xf32>
    %238 = vector.extract_strided_slice %15 {offsets = [8, 16], sizes = [8, 8], strides = [1, 1]} : vector<16x96xf32> to vector<8x8xf32>
    %239 = vector.extract_strided_slice %238 {offsets = [0, 4], sizes = [8, 4], strides = [1, 1]} : vector<8x8xf32> to vector<8x4xf32>
    %cst_60 = arith.constant 0.000000e+00 : f32
    %240 = vector.broadcast %cst_60 : f32 to vector<8x4xf32>
    %241 = arith.subf %240, %239 : vector<8x4xf32>
    %242 = vector.extract_strided_slice %238 {offsets = [0, 0], sizes = [8, 4], strides = [1, 1]} : vector<8x8xf32> to vector<8x4xf32>
    %243 = tpu.concatenate %241, %242 in 1 : vector<8x4xf32>, vector<8x4xf32> -> vector<8x8xf32>
    %244 = arith.mulf %238, %16 : vector<8x8xf32>
    %245 = arith.mulf %243, %17 : vector<8x8xf32>
    %246 = arith.addf %244, %245 : vector<8x8xf32>
    %247 = vector.extract_strided_slice %15 {offsets = [8, 48], sizes = [8, 8], strides = [1, 1]} : vector<16x96xf32> to vector<8x8xf32>
    %248 = vector.extract_strided_slice %247 {offsets = [0, 4], sizes = [8, 4], strides = [1, 1]} : vector<8x8xf32> to vector<8x4xf32>
    %cst_61 = arith.constant 0.000000e+00 : f32
    %249 = vector.broadcast %cst_61 : f32 to vector<8x4xf32>
    %250 = arith.subf %249, %248 : vector<8x4xf32>
    %251 = vector.extract_strided_slice %247 {offsets = [0, 0], sizes = [8, 4], strides = [1, 1]} : vector<8x8xf32> to vector<8x4xf32>
    %252 = tpu.concatenate %250, %251 in 1 : vector<8x4xf32>, vector<8x4xf32> -> vector<8x8xf32>
    %253 = arith.mulf %247, %16 : vector<8x8xf32>
    %254 = arith.mulf %252, %17 : vector<8x8xf32>
    %255 = arith.addf %253, %254 : vector<8x8xf32>
    %256 = vector.extract_strided_slice %15 {offsets = [8, 80], sizes = [8, 8], strides = [1, 1]} : vector<16x96xf32> to vector<8x8xf32>
    %257 = tpu.transpose %255, [1, 0] : vector<8x8xf32> -> vector<8x8xf32>
    %cst_62 = arith.constant dense<0.000000e+00> : vector<8x8xf32>
    %258 = tpu.matmul %246, %257, %cst_62 {dimension_numbers = #tpu.dot_dimension_numbers<[1], [0], [0], [1], [0, 0, 1, 1], [], []>} : vector<8x8xf32>, vector<8x8xf32>, vector<8x8xf32> -> vector<8x8xf32>
    %cst_63 = arith.constant 0.353553385 : f32
    %259 = vector.broadcast %cst_63 : f32 to vector<8x8xf32>
    %260 = arith.mulf %258, %259 : vector<8x8xf32>
    %cst_64 = arith.constant -1.000000e+30 : f32
    %261 = vector.broadcast %cst_64 : f32 to vector<8x8xf32>
    %262 = arith.select %20, %260, %261 : vector<8x8xi1>, vector<8x8xf32>
    %cst_65 = arith.constant dense<0xFF800000> : vector<8xf32>
    %263 = vector.multi_reduction <maximumf>, %262, %cst_65 [1] : vector<8x8xf32> to vector<8xf32>
    %264 = vector.shape_cast %263 : vector<8xf32> to vector<8x1xf32>
    %265 = vector.broadcast %264 : vector<8x1xf32> to vector<8x8xf32>
    %266 = arith.subf %262, %265 : vector<8x8xf32>
    %267 = math.exp %266 : vector<8x8xf32>
    %cst_66 = arith.constant dense<0.000000e+00> : vector<8xf32>
    %268 = vector.multi_reduction <add>, %267, %cst_66 [1] : vector<8x8xf32> to vector<8xf32>
    %269 = vector.shape_cast %268 : vector<8xf32> to vector<8x1xf32>
    %270 = tpu.reciprocal %269 {approx = true} : vector<8x1xf32> -> vector<8x1xf32>
    %271 = vector.broadcast %270 : vector<8x1xf32> to vector<8x8xf32>
    %272 = arith.mulf %267, %271 : vector<8x8xf32>
    %cst_67 = arith.constant dense<0.000000e+00> : vector<8x8xf32>
    %273 = tpu.matmul %272, %256, %cst_67 {dimension_numbers = #tpu.dot_dimension_numbers<[1], [0], [0], [1], [0, 0, 1, 1], [], []>} : vector<8x8xf32>, vector<8x8xf32>, vector<8x8xf32> -> vector<8x8xf32>
    %274 = vector.extract_strided_slice %15 {offsets = [8, 24], sizes = [8, 8], strides = [1, 1]} : vector<16x96xf32> to vector<8x8xf32>
    %275 = vector.extract_strided_slice %274 {offsets = [0, 4], sizes = [8, 4], strides = [1, 1]} : vector<8x8xf32> to vector<8x4xf32>
    %cst_68 = arith.constant 0.000000e+00 : f32
    %276 = vector.broadcast %cst_68 : f32 to vector<8x4xf32>
    %277 = arith.subf %276, %275 : vector<8x4xf32>
    %278 = vector.extract_strided_slice %274 {offsets = [0, 0], sizes = [8, 4], strides = [1, 1]} : vector<8x8xf32> to vector<8x4xf32>
    %279 = tpu.concatenate %277, %278 in 1 : vector<8x4xf32>, vector<8x4xf32> -> vector<8x8xf32>
    %280 = arith.mulf %274, %16 : vector<8x8xf32>
    %281 = arith.mulf %279, %17 : vector<8x8xf32>
    %282 = arith.addf %280, %281 : vector<8x8xf32>
    %283 = vector.extract_strided_slice %15 {offsets = [8, 56], sizes = [8, 8], strides = [1, 1]} : vector<16x96xf32> to vector<8x8xf32>
    %284 = vector.extract_strided_slice %283 {offsets = [0, 4], sizes = [8, 4], strides = [1, 1]} : vector<8x8xf32> to vector<8x4xf32>
    %cst_69 = arith.constant 0.000000e+00 : f32
    %285 = vector.broadcast %cst_69 : f32 to vector<8x4xf32>
    %286 = arith.subf %285, %284 : vector<8x4xf32>
    %287 = vector.extract_strided_slice %283 {offsets = [0, 0], sizes = [8, 4], strides = [1, 1]} : vector<8x8xf32> to vector<8x4xf32>
    %288 = tpu.concatenate %286, %287 in 1 : vector<8x4xf32>, vector<8x4xf32> -> vector<8x8xf32>
    %289 = arith.mulf %283, %16 : vector<8x8xf32>
    %290 = arith.mulf %288, %17 : vector<8x8xf32>
    %291 = arith.addf %289, %290 : vector<8x8xf32>
    %292 = vector.extract_strided_slice %15 {offsets = [8, 88], sizes = [8, 8], strides = [1, 1]} : vector<16x96xf32> to vector<8x8xf32>
    %293 = tpu.transpose %291, [1, 0] : vector<8x8xf32> -> vector<8x8xf32>
    %cst_70 = arith.constant dense<0.000000e+00> : vector<8x8xf32>
    %294 = tpu.matmul %282, %293, %cst_70 {dimension_numbers = #tpu.dot_dimension_numbers<[1], [0], [0], [1], [0, 0, 1, 1], [], []>} : vector<8x8xf32>, vector<8x8xf32>, vector<8x8xf32> -> vector<8x8xf32>
    %cst_71 = arith.constant 0.353553385 : f32
    %295 = vector.broadcast %cst_71 : f32 to vector<8x8xf32>
    %296 = arith.mulf %294, %295 : vector<8x8xf32>
    %cst_72 = arith.constant -1.000000e+30 : f32
    %297 = vector.broadcast %cst_72 : f32 to vector<8x8xf32>
    %298 = arith.select %20, %296, %297 : vector<8x8xi1>, vector<8x8xf32>
    %cst_73 = arith.constant dense<0xFF800000> : vector<8xf32>
    %299 = vector.multi_reduction <maximumf>, %298, %cst_73 [1] : vector<8x8xf32> to vector<8xf32>
    %300 = vector.shape_cast %299 : vector<8xf32> to vector<8x1xf32>
    %301 = vector.broadcast %300 : vector<8x1xf32> to vector<8x8xf32>
    %302 = arith.subf %298, %301 : vector<8x8xf32>
    %303 = math.exp %302 : vector<8x8xf32>
    %cst_74 = arith.constant dense<0.000000e+00> : vector<8xf32>
    %304 = vector.multi_reduction <add>, %303, %cst_74 [1] : vector<8x8xf32> to vector<8xf32>
    %305 = vector.shape_cast %304 : vector<8xf32> to vector<8x1xf32>
    %306 = tpu.reciprocal %305 {approx = true} : vector<8x1xf32> -> vector<8x1xf32>
    %307 = vector.broadcast %306 : vector<8x1xf32> to vector<8x8xf32>
    %308 = arith.mulf %303, %307 : vector<8x8xf32>
    %cst_75 = arith.constant dense<0.000000e+00> : vector<8x8xf32>
    %309 = tpu.matmul %308, %292, %cst_75 {dimension_numbers = #tpu.dot_dimension_numbers<[1], [0], [0], [1], [0, 0, 1, 1], [], []>} : vector<8x8xf32>, vector<8x8xf32>, vector<8x8xf32> -> vector<8x8xf32>
    %310 = tpu.concatenate %201, %237, %273, %309 in 1 : vector<8x8xf32>, vector<8x8xf32>, vector<8x8xf32>, vector<8x8xf32> -> vector<8x32xf32>
    %311 = tpu.concatenate %165, %310 in 0 : vector<8x32xf32>, vector<8x32xf32> -> vector<16x32xf32>
    %c0_76 = arith.constant 0 : index
    %c0_77 = arith.constant 0 : index
    %312 = vector.load %arg3[%c0_76, %c0_77] : memref<32x32xf32, #tpu.memory_space<vmem>>, vector<32x32xf32>
    %cst_78 = arith.constant dense<0.000000e+00> : vector<16x32xf32>
    %313 = tpu.matmul %311, %312, %cst_78 {dimension_numbers = #tpu.dot_dimension_numbers<[1], [0], [0], [1], [0, 0, 1, 1], [], []>} : vector<16x32xf32>, vector<32x32xf32>, vector<16x32xf32> -> vector<16x32xf32>
    %314 = arith.addf %0, %313 : vector<16x32xf32>
    %c0_79 = arith.constant 0 : index
    %c0_80 = arith.constant 0 : index
    %315 = vector.load %arg4[%c0_79, %c0_80] : memref<1x32xf32, #tpu.memory_space<vmem>>, vector<1x32xf32>
    %316 = arith.mulf %314, %314 : vector<16x32xf32>
    %cst_81 = arith.constant dense<0.000000e+00> : vector<16xf32>
    %317 = vector.multi_reduction <add>, %316, %cst_81 [1] : vector<16x32xf32> to vector<16xf32>
    %318 = vector.shape_cast %317 : vector<16xf32> to vector<16x1xf32>
    %cst_82 = arith.constant 3.200000e+01 : f32
    %319 = vector.broadcast %cst_82 : f32 to vector<16x1xf32>
    %320 = arith.divf %318, %319 : vector<16x1xf32>
    %cst_83 = arith.constant 9.99999997E-7 : f32
    %321 = vector.broadcast %cst_83 : f32 to vector<16x1xf32>
    %322 = arith.addf %320, %321 : vector<16x1xf32>
    %323 = math.rsqrt %322 : vector<16x1xf32>
    %324 = vector.broadcast %323 : vector<16x1xf32> to vector<16x32xf32>
    %325 = arith.mulf %314, %324 : vector<16x32xf32>
    %326 = vector.broadcast %315 : vector<1x32xf32> to vector<16x32xf32>
    %327 = arith.mulf %325, %326 : vector<16x32xf32>
    %c0_84 = arith.constant 0 : index
    %c0_85 = arith.constant 0 : index
    %328 = vector.load %arg5[%c0_84, %c0_85] : memref<32x64xf32, #tpu.memory_space<vmem>>, vector<32x64xf32>
    %cst_86 = arith.constant dense<0.000000e+00> : vector<16x64xf32>
    %329 = tpu.matmul %327, %328, %cst_86 {dimension_numbers = #tpu.dot_dimension_numbers<[1], [0], [0], [1], [0, 0, 1, 1], [], []>} : vector<16x32xf32>, vector<32x64xf32>, vector<16x64xf32> -> vector<16x64xf32>
    %c0_87 = arith.constant 0 : index
    %c0_88 = arith.constant 0 : index
    %330 = vector.load %arg6[%c0_87, %c0_88] : memref<32x64xf32, #tpu.memory_space<vmem>>, vector<32x64xf32>
    %cst_89 = arith.constant dense<0.000000e+00> : vector<16x64xf32>
    %331 = tpu.matmul %327, %330, %cst_89 {dimension_numbers = #tpu.dot_dimension_numbers<[1], [0], [0], [1], [0, 0, 1, 1], [], []>} : vector<16x32xf32>, vector<32x64xf32>, vector<16x64xf32> -> vector<16x64xf32>
    %cst_90 = arith.constant 0.000000e+00 : f32
    %332 = vector.broadcast %cst_90 : f32 to vector<16x64xf32>
    %333 = arith.subf %332, %329 : vector<16x64xf32>
    %334 = math.exp %333 : vector<16x64xf32>
    %cst_91 = arith.constant 1.000000e+00 : f32
    %335 = vector.broadcast %cst_91 : f32 to vector<16x64xf32>
    %336 = arith.addf %335, %334 : vector<16x64xf32>
    %337 = tpu.reciprocal %336 {approx = true} : vector<16x64xf32> -> vector<16x64xf32>
    %338 = arith.mulf %329, %337 : vector<16x64xf32>
    %339 = arith.mulf %338, %331 : vector<16x64xf32>
    %c0_92 = arith.constant 0 : index
    %c0_93 = arith.constant 0 : index
    %340 = vector.load %arg7[%c0_92, %c0_93] : memref<64x32xf32, #tpu.memory_space<vmem>>, vector<64x32xf32>
    %cst_94 = arith.constant dense<0.000000e+00> : vector<16x32xf32>
    %341 = tpu.matmul %339, %340, %cst_94 {dimension_numbers = #tpu.dot_dimension_numbers<[1], [0], [0], [1], [0, 0, 1, 1], [], []>} : vector<16x64xf32>, vector<64x32xf32>, vector<16x32xf32> -> vector<16x32xf32>
    %342 = arith.addf %314, %341 : vector<16x32xf32>
    %c0_95 = arith.constant 0 : index
    %c0_96 = arith.constant 0 : index
    %343 = vector.load %arg10[%c0_95, %c0_96] : memref<16x32xf32, #tpu.memory_space<vmem>>, vector<16x32xf32>
    tpu.vector_store %arg10[%c0_95, %c0_96], %342 {strides = array<i32>} : memref<16x32xf32, #tpu.memory_space<vmem>>, vector<16x32xf32>,
    return
  }
}

</mosaic_0001>

<bundles_post_ra>
// kernel: masked_llama_decoder_layer.1
= control target key start
LH: loop header
LB: loop body
LE: loop exit
PB: predicated region body
PF: predicated region fallthrough
CT: control target
= control target key end

     0   :  { %15 = vsyncpa [#allocation3], 0  ;;  %s1893_s0 = inlined_call_operand.hbm [shape: f32[16,32], index: 0, kind: input, shape index: {}]   ;;  %s1894_s1 = inlined_call_operand.vmem [shape: f32[1,32], index: 1, kind: input, shape index: {}]   ;;  %s1895_s2 = inlined_call_operand.vmem [shape: f32[32,96], index: 2, kind: input, shape index: {}]   ;;  %s1896_s3 = inlined_call_operand.vmem [shape: f32[32,32], index: 3, kind: input, shape index: {}]   ;;  %s1897_s4 = inlined_call_operand.vmem [shape: f32[1,32], index: 4, kind: input, shape index: {}]   ;;  %s1898_s5 = inlined_call_operand.vmem [shape: f32[32,64], index: 5, kind: input, shape index: {}]   ;;  %s1899_s6 = inlined_call_operand.hbm [shape: f32[32,64], index: 6, kind: input, shape index: {}]   ;;  %s1900_s7 = inlined_call_operand.vmem [shape: f32[64,32], index: 7, kind: input, shape index: {}]   ;;  %s1901_s8 = inlined_call_operand.vmem [shape: f32[8,8], index: 8, kind: input, shape index: {}]   ;;  %s1902_s9 = inlined_call_operand.vmem [shape: f32[8,8], index: 9, kind: input, shape index: {}]   ;;  %s1903_s10 = inlined_call_operand.hbm [shape: f32[16,32], index: 10, kind: output, shape index: {}]  }
   0x1   :  { %16 = vsyncpa [#allocation6], 0 }
   0x2   :  { %17 = vsyncpa [#allocation4], 0  ;;  %s22_s15 = sshll.u32 %s1893_s0, 4  ;;  %s1388_s16 = smov [#allocation2]   ;;  %s23_s15 = int_to_ptr.hbm [resolvable:$true] %s22_s15 }
   0x3   :  { %s24_s17 = sshll.u32 %s1388_s16, 4  ;;  %s45_s20 = sshll.u32 %s1899_s6, 4  ;;  %s25_s17 = int_to_ptr.vmem [resolvable:$true] %s24_s17  ;;  %s46_s20 = int_to_ptr.hbm [resolvable:$true] %s45_s20 }
   0x4   :  { %s1389_s21 = smov 128   ;;  %s1390_s22 = smov 8  }
   0x5   :  { %30 = dma.hbm_to_vmem [thread:$0]  %s23_s15, 256, %s25_s17, [#allocation3], %s1389_s21, %s1389_s21, %s1390_s22  }
   0x6   :  { %s1391_s23 = smov [#allocation5]  }
   0x7   :  { %s47_s24 = sshll.u32 %s1391_s23, 4  ;;  %s48_s24 = int_to_ptr.vmem [resolvable:$true] %s47_s24 }
   0x8   :  { %53 = dma.hbm_to_vmem [thread:$0]  %s46_s20, 512, %s48_s24, [#allocation6], %s1389_s21, %s1389_s21, %s1390_s22  }
   0x9   :  { %1382 = dma.done.wait [#allocation3], 256  }
   0xa   :  { %1383 = vsyncadd [#allocation3], 4294967040 }
   0xb   :  { %1384 = dma.done.wait [#allocation6], 512  }
   0xc   :  { %1385 = vsyncadd [#allocation6], 4294966784  ;;  %v1484_v0 = vld [vmem:[#allocation2] sm:$0xff]  ;;  %vm73_vm0 = vcmask 261120   ;;  %v1392_v3 = vmov 32.0   ;;  %v121_v7 = vld [vmem:[%s1895_s2 + $0x18] sm:$0xff] }
   0xd   :  { %v71_v1 = vmul.f32 %v1484_v0, %v1484_v0  ;;  %1260 = vrcp.f32 %v1392_v3  ;;  %140 = vmatpush.msra.mxu0 %v121_v7  ;;  %v120_v8 = vld [vmem:[%s1895_s2 + $0x10] sm:$0xff]  ;;  %v119_v9 = vld [vmem:[%s1895_s2 + $0x8] sm:$0xff]  ;;  %v118_v11 = vld [vmem:[%s1895_s2] sm:$0xff]  ;;  %s1393_s12 = smov 92   ;;  %s1394_s13 = smov 100   ;;  %vm167_vm5 = vcmask 31744  }
   0xe   :  { %v1507_v23 = vld [vmem:[%s1894_s1] ss:$0 sm:$0xff]  ;;  %s1395_s1 = smov 116   ;;  %s1396_s14 = smov 84   ;;  %v1576_v51 = vld [vmem:[#allocation2 + $0x8] sm:$0xff]  ;;  %vm193_vm9 = vcmask 64512  }
   0xf   :  { %v74_v2 = vsel %vm73_vm0, %v71_v1, 0.0  ;;  %141 = vmatpush.msra.mxu0 %v120_v8  ;;  %s1397_s15 = smov 76   ;;  %s1398_s16 = smov 124   ;;  %v1536_v29 = vld [vmem:[%s1901_s8] sm:$0xff]  ;;  %v72_v52 = vmul.f32 %v1576_v51, %v1576_v51  ;;  %vm580_vm11 = vcmask 130048   ;;  %vm582_vm12 = vcmask 195584  }
  0x10   :  { %75 = vadd.xlane.f32.xlu0 %v74_v2  ;;  %s1399_s19 = smov 40   ;;  %s1400_s20 = smov 108   ;;  %v1549_v32 = vld [vmem:[%s1902_s9] sm:$0xff] }
  0x11   :  { %142 = vmatpush.msra.mxu0 %v119_v9  ;;  %s1401_s23 = smov 32   ;;  %s1402_s9 = smov 48   ;;  %v77_v53 = vsel %vm73_vm0, %v72_v52, 0.0 }
  0x12   :  { %s1403_s0 = smov 16   ;;  %s1404_s6 = smov 4  }
  0x13   :  { %v1261_v4 = vpop.eup %1260  ;;  %143 = vmatpush.msra.mxu0 %v118_v11  ;;  %s1405_s25 = smov 96   ;;  %s1406_s26 = smov 88  }
  0x14   :  { %v81_v5 = vmul.f32 32.0, %v1261_v4  ;;  %vm85_vm1 = vweird.f32 %v1261_v4  ;;  %s1407_s27 = smov 120   ;;  %s1408_s28 = smov 80  }
  0x15   :  { %s1409_s29 = smov 68   ;;  %s1410_s30 = smov 112  }
  0x16   :  { %v82_v6 = vsub.f32 1.0, %v81_v5  ;;  %s1411_s2 = smov 56   ;;  %s1412_s11 = smov 24  }
  0x17   :  { %s1181_s24 = sshll.u32 %s1903_s10, 4  ;;  %s1182_s24 = int_to_ptr.hbm [resolvable:$true] %s1181_s24 }
  0x18   :  { %v83_v10 = vmul.f32 %v1261_v4, %v82_v6 }
  0x1a   :  { %v84_v12 = vadd.f32 %v1261_v4, %v83_v10 }
  0x1c   :  { %v1501_v13 = vsel %vm85_vm1, %v1261_v4, %v84_v12 }
  0x83   :  { %v76_v14 = vpop.xlane.xlu0 %75 }
  0x84   :  { %v87_v15 = vmul.f32 %v1501_v13, %v76_v14 }
  0x86   :  { %v89_v16 = vadd.f32 1e-06, %v87_v15 }
  0x88   :  { %1262 = vrsqrt.f32 %v89_v16  ;;  %vm97_vm3 = vweird.f32 %v89_v16 }
  0x8e   :  { %v1263_v17 = vpop.eup %1262 }
  0x8f   :  { %v92_v18 = vmul.f32 %v1263_v17, %v89_v16  ;;  %vm98_vm2 = vweird.f32 %v1263_v17 }
  0x90   :  { %vm99_vm4 = vmor %vm97_vm3, %vm98_vm2 }
  0x91   :  { %v93_v19 = vmul.f32 %v1263_v17, %v92_v18 }
  0x93   :  { %v94_v20 = vmul.f32 0.5, %v93_v19 }
  0x95   :  { %v95_v21 = vsub.f32 1.5, %v94_v20 }
  0x97   :  { %v96_v22 = vmul.f32 %v1263_v17, %v95_v21 }
  0x99   :  { %v100_v24 = vsel %vm99_vm4, %v1263_v17, %v96_v22  ;;  %vm1141_vm4 = vcmask 523264  }
  0x9a   :  { %v111_v25 = vmul.f32 %v100_v24, %v1484_v0 }
  0x9c   :  { %v116_v26 = vmul.f32 %v1507_v23, %v111_v25 }
  0x9e   :  { %1195 = vmatmul.msk.f32.vlgmr.msra.gmra.mxu0 %vm73_vm0, %v116_v26 }
 0x11b   :  { %v1512_v27 = vpop.f32.mrf.mxu0 }
 0x11c   :  { %278 = vrot.lane.b32.xlu2 %v1512_v27, %s1393_s12  ;;  %175 = vrot.lane.b32.xlu1 %v1512_v27, %s1394_s13  ;;  %v1519_v28 = vsub.f32 0.0, %v1512_v27 }
 0x11e   :  { %172 = vrot.lane.b32.xlu0 %v1519_v28, %s1393_s12 }
 0x124   :  { %258 = vrot.lane.b32.xlu2 %v1519_v28, %s1395_s1  ;;  %275 = vrot.lane.b32.xlu1 %v1519_v28, %s1396_s14 }
 0x126   :  { %364 = vrot.lane.b32.xlu0 %v1512_v27, %s1395_s1 }
 0x12c   :  { %378 = vrot.lane.b32.xlu2 %v1519_v28, %s1397_s15  ;;  %261 = vrot.lane.b32.xlu1 %v1512_v27, %s1398_s16 }
 0x12e   :  { %282 = vrot.lane.b32.xlu0 %v1536_v29, %s1399_s19 }
 0x134   :  { %361 = vrot.lane.b32.xlu2 %v1519_v28, %s1400_s20  ;;  %381 = vrot.lane.b32.xlu1 %v1512_v27, %s1396_s14 }
 0x13c   :  { %180 = vrot.lane.b32.xlu1 %v1536_v29, %s1401_s23 }
 0x176   :  { %v279_v30 = vpop.permute.xlu2 %278 }
 0x17e   :  { %v259_v38 = vpop.permute.xlu2 %258 }
 0x186   :  { %v379_v43 = vpop.permute.xlu2 %378 }
 0x18e   :  { %v176_v31 = vpop.permute.xlu1 %175  ;;  %v362_v48 = vpop.permute.xlu2 %361 }
 0x190   :  { %v173_v33 = vpop.permute.xlu0 %172 }
 0x191   :  { %v178_v34 = vsel %vm167_vm5, %v173_v33, %v176_v31  ;;  %v169_v33 = vmul.f32 %v1536_v29, %v1512_v27 }
 0x192   :  { %v184_v35 = vmul.f32 %v178_v34, %v1549_v32 }
 0x194   :  { %186 = vrot.lane.b32.xlu2 %v184_v35, %s1401_s23 }
 0x196   :  { %v276_v36 = vpop.permute.xlu1 %275 }
 0x197   :  { %v281_v37 = vsel %vm167_vm5, %v276_v36, %v279_v30 }
 0x198   :  { %v286_v39 = vmul.f32 %v281_v37, %v1549_v32  ;;  %v365_v47 = vpop.permute.xlu0 %364 }
 0x199   :  { %v367_v49 = vsel %vm167_vm5, %v362_v48, %v365_v47 }
 0x19a   :  { %288 = vrot.lane.b32.xlu1 %v286_v39, %s1399_s19  ;;  %v372_v50 = vmul.f32 %v367_v49, %v1549_v32 }
 0x19c   :  { %265 = vrot.lane.b32.xlu2 %v1536_v29, %s1390_s22 }
 0x19e   :  { %v262_v40 = vpop.permute.xlu1 %261 }
 0x19f   :  { %v264_v41 = vsel %vm167_vm5, %v259_v38, %v262_v40 }
 0x1a0   :  { %v269_v42 = vmul.f32 %v264_v41, %v1549_v32  ;;  %v1588_v58 = vpop.permute.xlu0 %282 }
 0x1a1   :  { %v285_v59 = vmul.f32 %v1588_v58, %v1512_v27 }
 0x1a2   :  { %385 = vrot.lane.b32.xlu1 %v1536_v29, %s1402_s9  ;;  %271 = vrot.lane.b32.xlu0 %v269_v42, %s1390_s22 }
 0x1a6   :  { %v382_v44 = vpop.permute.xlu1 %381 }
 0x1a7   :  { %v384_v45 = vsel %vm167_vm5, %v379_v43, %v382_v44 }
 0x1a8   :  { %v389_v46 = vmul.f32 %v384_v45, %v1549_v32 }
 0x1aa   :  { %368 = vrot.lane.b32.xlu0 %v1536_v29, %s1403_s0  ;;  %391 = vrot.lane.b32.xlu2 %v389_v46, %s1402_s9 }
 0x1ae   :  { %v1583_v54 = vpop.permute.xlu1 %180 }
 0x1af   :  { %v183_v55 = vmul.f32 %v1583_v54, %v1512_v27 }
 0x1b2   :  { %160 = vrot.lane.b32.xlu0 %v1519_v28, %s1398_s16  ;;  %374 = vrot.lane.b32.xlu2 %v372_v50, %s1403_s0 }
 0x1ba   :  { %164 = vrot.lane.b32.xlu2 %v1512_v27, %s1404_s6 }
 0x1cc   :  { %78 = vadd.xlane.f32.xlu1 %v77_v53 }
 0x1e5   :  { %467 = vrot.lane.b32.xlu1 %v1512_v27, %s1400_s20 }
 0x1ee   :  { %v187_v56 = vpop.permute.xlu2 %186 }
 0x1ef   :  { %v189_v57 = vadd.f32 %v187_v56, %v183_v55 }
 0x1f1   :  { %191 = vrot.lane.b32.xlu0 %v189_v57, %s1405_s25 }
 0x1f6   :  { %v1592_v61 = vpop.permute.xlu2 %265 }
 0x1f7   :  { %v268_v63 = vmul.f32 %v1592_v61, %v1512_v27 }
 0x204   :  { %v392_v2 = vpop.permute.xlu2 %391 }
 0x20c   :  { %v289_v60 = vpop.permute.xlu1 %288  ;;  %v375_v9 = vpop.permute.xlu2 %374 }
 0x20d   :  { %v291_v62 = vadd.f32 %v289_v60, %v285_v59 }
 0x20f   :  { %296 = vrot.lane.b32.xlu2 %v291_v62, %s1406_s26 }
 0x214   :  { %v1597_v1 = vpop.permute.xlu1 %385  ;;  %v272_v4 = vpop.permute.xlu0 %271 }
 0x215   :  { %v388_v3 = vmul.f32 %v1597_v1, %v1512_v27  ;;  %v274_v5 = vadd.f32 %v272_v4, %v268_v63  ;;  %v165_v26 = vpop.permute.xlu2 %164 }
 0x217   :  { %v394_v6 = vadd.f32 %v392_v2, %v388_v3  ;;  %293 = vrot.lane.b32.xlu0 %v274_v5, %s1407_s27 }
 0x219   :  { %399 = vrot.lane.b32.xlu2 %v394_v6, %s1408_s28 }
 0x21c   :  { %v1603_v7 = vpop.permute.xlu0 %368 }
 0x21d   :  { %v371_v8 = vmul.f32 %v1603_v7, %v1512_v27 }
 0x21f   :  { %v377_v10 = vadd.f32 %v375_v9, %v371_v8 }
 0x221   :  { %481 = vrot.lane.b32.xlu2 %v1519_v28, %s1409_s29  ;;  %396 = vrot.lane.b32.xlu0 %v377_v10, %s1410_s30 }
 0x224   :  { %v161_v25 = vpop.permute.xlu0 %160 }
 0x229   :  { %464 = vrot.lane.b32.xlu2 %v1519_v28, %s1394_s13  ;;  %484 = vrot.lane.b32.xlu0 %v1512_v27, %s1397_s15  ;;  %v168_v28 = vsel %vm167_vm5, %v161_v25, %v165_v26 }
 0x22a   :  { %v170_v30 = vmul.f32 %v168_v28, %v1549_v32 }
 0x22c   :  { %v171_v34 = vadd.f32 %v170_v30, %v169_v33 }
 0x23f   :  { %v79_v11 = vpop.xlane.xlu1 %78 }
 0x240   :  { %v88_v12 = vmul.f32 %v1501_v13, %v79_v11 }
 0x242   :  { %v90_v14 = vadd.f32 1e-06, %v88_v12 }
 0x244   :  { %1264 = vrsqrt.f32 %v90_v14  ;;  %vm107_vm7 = vweird.f32 %v90_v14 }
 0x24a   :  { %v1265_v15 = vpop.eup %1264 }
 0x24b   :  { %v102_v16 = vmul.f32 %v1265_v15, %v90_v14  ;;  %vm108_vm6 = vweird.f32 %v1265_v15 }
 0x24c   :  { %vm109_vm8 = vmor %vm107_vm7, %vm108_vm6 }
 0x24d   :  { %v103_v17 = vmul.f32 %v1265_v15, %v102_v16 }
 0x24f   :  { %v104_v18 = vmul.f32 0.5, %v103_v17 }
 0x251   :  { %v105_v19 = vsub.f32 1.5, %v104_v18 }
 0x253   :  { %v106_v20 = vmul.f32 %v1265_v15, %v105_v19 }
 0x255   :  { %v110_v21 = vsel %vm109_vm8, %v1265_v15, %v106_v20 }
 0x256   :  { %v112_v22 = vmul.f32 %v110_v21, %v1576_v51 }
 0x257   :  { %v468_v45 = vpop.permute.xlu1 %467 }
 0x258   :  { %v117_v24 = vmul.f32 %v1507_v23, %v112_v22 }
 0x25a   :  { %1196 = vmatmul.msk.f32.gmra.mxu0 %vm73_vm0, %v117_v24 }
 0x263   :  { %v192_v31 = vpop.permute.xlu0 %191 }
 0x264   :  { %1197 = vmatpush.xpose.msk.msra.mxu3 %vm193_vm9, %v192_v31  ;;  %v153_v31 = vlaneseq }
 0x267   :  { %1198 = vmatmul.msk.f32.vlgmr.msra.gmra.mxu3 %vm193_vm9, %v171_v34  ;;  %v154_v34 = vshrl.u32 %v153_v31, 7 }
 0x269   :  { %v297_v35 = vpop.permute.xlu2 %296 }
 0x26a   :  { %1200 = vmatpush.xpose.msk.msrb.mxu3 %vm193_vm9, %v297_v35  ;;  %v156_v35 = vand.u32 127, %v153_v31 }
 0x26c   :  { %vm1704_vm10 = vcmp.le.s32.totalorder %v156_v35, %v154_v34 }
 0x273   :  { %v400_v23 = vpop.permute.xlu2 %399 }
 0x274   :  { %1203 = vmatpush.xpose.msk.msra.mxu1 %vm193_vm9, %v400_v23 }
 0x27b   :  { %v482_v41 = vpop.permute.xlu2 %481 }
 0x283   :  { %v465_v44 = vpop.permute.xlu2 %464 }
 0x284   :  { %v470_v46 = vsel %vm167_vm5, %v465_v44, %v468_v45 }
 0x285   :  { %v475_v47 = vmul.f32 %v470_v46, %v1549_v32 }
 0x289   :  { %v294_v36 = vpop.permute.xlu0 %293 }
 0x28a   :  { %1201 = vmatmul.msk.f32.vlgmr.msrb.gmra.mxu3 %vm193_vm9, %v294_v36 }
 0x293   :  { %v397_v37 = vpop.permute.xlu0 %396 }
 0x294   :  { %1204 = vmatmul.msk.f32.vlgmr.msra.gmra.mxu1 %vm193_vm9, %v397_v37 }
 0x29b   :  { %v485_v40 = vpop.permute.xlu0 %484 }
 0x29c   :  { %v487_v42 = vsel %vm167_vm5, %v482_v41, %v485_v40 }
 0x29d   :  { %v492_v43 = vmul.f32 %v487_v42, %v1549_v32 }
 0x2d7   :  { %v1628_v38 = vpop.f32.mrf.mxu0 }
 0x2d8   :  { %600 = vrot.lane.b32.xlu2 %v1628_v38, %s1394_s13  ;;  %v1633_v39 = vsub.f32 0.0, %v1628_v38  ;;  %v699_v42 = vmul.f32 %v1588_v58, %v1628_v38  ;;  %v782_v35 = vmul.f32 %v1603_v7, %v1628_v38 }
 0x2da   :  { %678 = vrot.lane.b32.xlu1 %v1633_v39, %s1395_s1  ;;  %597 = vrot.lane.b32.xlu0 %v1633_v39, %s1393_s12 }
 0x2e0   :  { %692 = vrot.lane.b32.xlu2 %v1633_v39, %s1396_s14 }
 0x2e2   :  { %789 = vrot.lane.b32.xlu1 %v1633_v39, %s1397_s15  ;;  %889 = vrot.lane.b32.xlu0 %v1628_v38, %s1397_s15 }
 0x2e8   :  { %695 = vrot.lane.b32.xlu2 %v1628_v38, %s1393_s12  ;;  %s1413_s12 = smov 64  }
 0x2ea   :  { %875 = vrot.lane.b32.xlu0 %v1628_v38, %s1400_s20  ;;  %494 = vrot.lane.b32.xlu1 %v492_v43, %s1411_s2 }
 0x2f0   :  { %681 = vrot.lane.b32.xlu2 %v1628_v38, %s1398_s16 }
 0x2f2   :  { %488 = vrot.lane.b32.xlu0 %v1536_v29, %s1411_s2 }
 0x2f8   :  { %792 = vrot.lane.b32.xlu2 %v1628_v38, %s1396_s14 }
 0x2fa   :  { %471 = vrot.lane.b32.xlu0 %v1536_v29, %s1412_s11 }
 0x300   :  { %886 = vrot.lane.b32.xlu2 %v1633_v39, %s1409_s29 }
 0x302   :  { %477 = vrot.lane.b32.xlu0 %v475_v47, %s1412_s11 }
 0x308   :  { %775 = vrot.lane.b32.xlu2 %v1633_v39, %s1400_s20 }
 0x310   :  { %778 = vrot.lane.b32.xlu2 %v1628_v38, %s1395_s1  ;;  %s1415_s1 = smov 104  }
 0x311   :  { %v422_v33 = vpop.f32.mrf.mxu1 }
 0x312   :  { %v425_v23 = vmul.f32 0.35355338, %v422_v33 }
 0x314   :  { %v426_v37 = vsel %vm1704_vm10, %v425_v23, -1e+30 }
 0x315   :  { %v427_v40 = vsel %vm193_vm9, %v426_v37, -inf }
 0x318   :  { %872 = vrot.lane.b32.xlu2 %v1633_v39, %s1394_s13  ;;  %s1414_s13 = smov 72  }
 0x332   :  { %v601_v48 = vpop.permute.xlu2 %600 }
 0x33a   :  { %v693_v49 = vpop.permute.xlu2 %692 }
 0x342   :  { %v696_v50 = vpop.permute.xlu2 %695 }
 0x343   :  { %v698_v52 = vsel %vm167_vm5, %v693_v49, %v696_v50 }
 0x344   :  { %v700_v53 = vmul.f32 %v698_v52, %v1549_v32  ;;  %v216_v52 = vpop.f32.mrf.mxu3 }
 0x346   :  { %702 = vrot.lane.b32.xlu1 %v700_v53, %s1399_s19 }
 0x34a   :  { %v682_v55 = vpop.permute.xlu2 %681 }
 0x34c   :  { %v679_v56 = vpop.permute.xlu1 %678  ;;  %v598_v57 = vpop.permute.xlu0 %597 }
 0x34d   :  { %v603_v59 = vsel %vm167_vm5, %v598_v57, %v601_v48  ;;  %v684_v63 = vsel %vm167_vm5, %v679_v56, %v682_v55  ;;  %v604_v48 = vmul.f32 %v1583_v54, %v1628_v38  ;;  %v319_v55 = vpop.f32.mrf.mxu3 }
 0x34e   :  { %v605_v60 = vmul.f32 %v603_v59, %v1549_v32  ;;  %v686_v6 = vmul.f32 %v684_v63, %v1549_v32  ;;  %v322_v56 = vmul.f32 0.35355338, %v319_v55 }
 0x350   :  { %607 = vrot.lane.b32.xlu0 %v605_v60, %s1401_s23  ;;  %v323_v59 = vsel %vm1704_vm10, %v322_v56, -1e+30 }
 0x351   :  { %v324_v60 = vsel %vm193_vm9, %v323_v59, -inf }
 0x352   :  { %v793_v62 = vpop.permute.xlu2 %792 }
 0x354   :  { %v790_v2 = vpop.permute.xlu1 %789  ;;  %v890_v3 = vpop.permute.xlu0 %889 }
 0x355   :  { %v795_v4 = vsel %vm167_vm5, %v790_v2, %v793_v62  ;;  %v219_v62 = vmul.f32 0.35355338, %v216_v52 }
 0x356   :  { %v797_v5 = vmul.f32 %v795_v4, %v1549_v32 }
 0x358   :  { %799 = vrot.lane.b32.xlu1 %v797_v5, %s1402_s9  ;;  %688 = vrot.lane.b32.xlu0 %v686_v6, %s1390_s22  ;;  %v796_v6 = vmul.f32 %v1597_v1, %v1628_v38 }
 0x35a   :  { %v887_v8 = vpop.permute.xlu2 %886 }
 0x35b   :  { %v892_v9 = vsel %vm167_vm5, %v887_v8, %v890_v3  ;;  %v220_v3 = vsel %vm1704_vm10, %v219_v62, -1e+30 }
 0x35c   :  { %v894_v10 = vmul.f32 %v892_v9, %v1549_v32  ;;  %v876_v11 = vpop.permute.xlu0 %875  ;;  %v495_v16 = vpop.permute.xlu1 %494  ;;  %v221_v4 = vsel %vm193_vm9, %v220_v3, -inf  ;;  %v685_v9 = vmul.f32 %v1592_v61, %v1628_v38 }
 0x35e   :  { %896 = vrot.lane.b32.xlu2 %v894_v10, %s1411_s2 }
 0x360   :  { %335 = vrot.lane.b32.xlu0 %v1512_v27, %s1411_s2 }
 0x362   :  { %v776_v12 = vpop.permute.xlu2 %775 }
 0x364   :  { %v489_v14 = vpop.permute.xlu0 %488 }
 0x365   :  { %v491_v15 = vmul.f32 %v489_v14, %v1512_v27  ;;  %v893_v41 = vmul.f32 %v489_v14, %v1628_v38 }
 0x366   :  { %232 = vrot.lane.b32.xlu2 %v1512_v27, %s1413_s12 }
 0x367   :  { %v497_v17 = vadd.f32 %v495_v16, %v491_v15 }
 0x369   :  { %502 = vrot.lane.b32.xlu0 %v497_v17, %s1414_s13 }
 0x36a   :  { %v779_v18 = vpop.permute.xlu2 %778 }
 0x36b   :  { %v781_v19 = vsel %vm167_vm5, %v776_v12, %v779_v18 }
 0x36c   :  { %v783_v20 = vmul.f32 %v781_v19, %v1549_v32  ;;  %v472_v21 = vpop.permute.xlu0 %471 }
 0x36d   :  { %v474_v24 = vmul.f32 %v472_v21, %v1512_v27  ;;  %v879_v54 = vmul.f32 %v472_v21, %v1628_v38 }
 0x36e   :  { %785 = vrot.lane.b32.xlu1 %v783_v20, %s1403_s0 }
 0x372   :  { %v873_v22 = vpop.permute.xlu2 %872 }
 0x373   :  { %v878_v25 = vsel %vm167_vm5, %v873_v22, %v876_v11 }
 0x374   :  { %v880_v26 = vmul.f32 %v878_v25, %v1549_v32  ;;  %v478_v28 = vpop.permute.xlu0 %477 }
 0x375   :  { %v480_v30 = vadd.f32 %v478_v28, %v474_v24 }
 0x376   :  { %882 = vrot.lane.b32.xlu1 %v880_v26, %s1412_s11 }
 0x377   :  { %499 = vrot.lane.b32.xlu0 %v480_v30, %s1415_s1 }
 0x37e   :  { %438 = vrot.lane.b32.xlu1 %v1512_v27, %s1402_s9 }
 0x37f   :  { %590 = vrot.lane.b32.xlu0 %v1628_v38, %s1404_s6 }
 0x38f   :  { %428 = vmax.xlane.f32.xlu2 %v427_v40 }
 0x3a7   :  { %586 = vrot.lane.b32.xlu2 %v1633_v39, %s1398_s16 }
 0x3b8   :  { %v703_v43 = vpop.permute.xlu1 %702  ;;  %v897_v44 = vpop.permute.xlu2 %896 }
 0x3b9   :  { %v705_v45 = vadd.f32 %v703_v43, %v699_v42  ;;  %v899_v46 = vadd.f32 %v897_v44, %v893_v41 }
 0x3bb   :  { %710 = vrot.lane.b32.xlu1 %v705_v45, %s1406_s26  ;;  %v594_v45 = vmul.f32 %v1536_v29, %v1628_v38 }
 0x3c0   :  { %v233_v47 = vpop.permute.xlu2 %232 }
 0x3c1   :  { %253 = vmatpush.msra.mxu2 %v233_v47 }
 0x3c2   :  { %v608_v49 = vpop.permute.xlu0 %607 }
 0x3c3   :  { %v610_v50 = vadd.f32 %v608_v49, %v604_v48 }
 0x3c5   :  { %612 = vrot.lane.b32.xlu0 %v610_v50, %s1405_s25 }
 0x3ca   :  { %v689_v39 = vpop.permute.xlu0 %688  ;;  %v800_v58 = vpop.permute.xlu1 %799 }
 0x3cb   :  { %v802_v8 = vadd.f32 %v800_v58, %v796_v6  ;;  %v691_v10 = vadd.f32 %v689_v39, %v685_v9 }
 0x3d2   :  { %v336_v53 = vpop.permute.xlu0 %335 }
 0x3d3   :  { %356 = vmatpush.msrb.mxu2 %v336_v53 }
 0x3db   :  { %v503_v17 = vpop.permute.xlu0 %502 }
 0x3e0   :  { %v786_v57 = vpop.permute.xlu1 %785 }
 0x3e1   :  { %v788_v23 = vadd.f32 %v786_v57, %v782_v35 }
 0x3e5   :  { %325 = vmax.xlane.f32.xlu1 %v324_v60 }
 0x3e8   :  { %v883_v63 = vpop.permute.xlu1 %882 }
 0x3e9   :  { %v885_v2 = vadd.f32 %v883_v63, %v879_v54  ;;  %v500_v18 = vpop.permute.xlu0 %499 }
 0x3ef   :  { %222 = vmax.xlane.f32.xlu0 %v221_v4 }
 0x3f0   :  { %v439_v5 = vpop.permute.xlu1 %438 }
 0x3f1   :  { %459 = vmatpush.msra.mxu3 %v439_v5  ;;  %v591_v1 = vpop.permute.xlu0 %590 }
 0x3fe   :  { %807 = vrot.lane.b32.xlu1 %v802_v8, %s1408_s28 }
 0x402   :  { %v429_v11 = vpop.xlane.xlu2 %428 }
 0x403   :  { %v430_v12 = vsub.f32 %v426_v37, %v429_v11  ;;  %707 = vrot.lane.b32.xlu0 %v691_v10, %s1407_s27 }
 0x405   :  { %v431_v14 = vmul.f32 1.442695, %v430_v12 }
 0x407   :  { %1266 = vpow2.f32 %v431_v14 }
 0x40a   :  { %v587_v34 = vpop.permute.xlu2 %586 }
 0x40b   :  { %v593_v42 = vsel %vm167_vm5, %v587_v34, %v591_v1 }
 0x40c   :  { %v595_v44 = vmul.f32 %v593_v42, %v1549_v32 }
 0x40d   :  { %v1267_v15 = vpop.eup %1266 }
 0x40e   :  { %v433_v16 = vsel %vm193_vm9, %v1267_v15, 0.0  ;;  %v596_v7 = vadd.f32 %v595_v44, %v594_v45 }
 0x40f   :  { %434 = vadd.xlane.f32.xlu2 %v433_v16 }
 0x427   :  { %904 = vrot.lane.b32.xlu2 %v899_v46, %s1414_s13 }
 0x42d   :  { %v711_v61 = vpop.permute.xlu1 %710 }
 0x437   :  { %v613_v19 = vpop.permute.xlu0 %612 }
 0x438   :  { %1209 = vmatpush.xpose.msk.msrb.mxu3 %vm193_vm9, %v613_v19 }
 0x458   :  { %v326_v20 = vpop.xlane.xlu1 %325 }
 0x459   :  { %v327_v21 = vsub.f32 %v323_v59, %v326_v20 }
 0x45b   :  { %v328_v22 = vmul.f32 1.442695, %v327_v21 }
 0x45d   :  { %1268 = vpow2.f32 %v328_v22 }
 0x462   :  { %v223_v24 = vpop.xlane.xlu0 %222 }
 0x463   :  { %v1269_v25 = vpop.eup %1268  ;;  %v224_v26 = vsub.f32 %v220_v3, %v223_v24 }
 0x464   :  { %v330_v28 = vsel %vm193_vm9, %v1269_v25, 0.0 }
 0x465   :  { %v225_v30 = vmul.f32 1.442695, %v224_v26  ;;  %331 = vadd.xlane.f32.xlu1 %v330_v28 }
 0x467   :  { %1270 = vpow2.f32 %v225_v30 }
 0x46d   :  { %v1271_v31 = vpop.eup %1270 }
 0x46e   :  { %v227_v33 = vsel %vm193_vm9, %v1271_v31, 0.0 }
 0x46f   :  { %228 = vadd.xlane.f32.xlu0 %v227_v33 }
 0x470   :  { %v808_v43 = vpop.permute.xlu1 %807 }
 0x475   :  { %v708_v46 = vpop.permute.xlu0 %707 }
 0x47e   :  { %901 = vrot.lane.b32.xlu1 %v885_v2, %s1415_s1 }
 0x482   :  { %v435_v37 = vpop.xlane.xlu2 %434 }
 0x483   :  { %1272 = vrcp.f32 %v435_v37  ;;  %804 = vrot.lane.b32.xlu0 %v788_v23, %s1410_s30 }
 0x489   :  { %v1273_v40 = vpop.eup %1272 }
 0x48a   :  { %v437_v41 = vmul.f32 %v1273_v40, %v1267_v15  ;;  %v905_v32 = vpop.permute.xlu2 %904 }
 0x48c   :  { %1205 = vmatmul.msk.f32.vlgmr.msra.gmra.mxu3 %vm193_vm9, %v437_v41 }
 0x48d   :  { %1215 = vmatpush.xpose.msk.msra.mxu3 %vm193_vm9, %v808_v43 }
 0x494   :  { %1210 = vmatmul.msk.f32.vlgmr.msrb.gmra.mxu3 %vm193_vm9, %v596_v7 }
 0x4d8   :  { %v332_v48 = vpop.xlane.xlu1 %331 }
 0x4e2   :  { %v229_v47 = vpop.xlane.xlu0 %228 }
 0x4e3   :  { %1274 = vrcp.f32 %v229_v47 }
 0x4e4   :  { %1276 = vrcp.f32 %v332_v48 }
 0x4e9   :  { %v1275_v49 = vpop.eup %1274 }
 0x4ea   :  { %v231_v50 = vmul.f32 %v1275_v49, %v1271_v31  ;;  %v1277_v39 = vpop.eup %1276 }
 0x4eb   :  { %v334_v52 = vmul.f32 %v1277_v39, %v1269_v25 }
 0x4ec   :  { %1199 = vmatmul.msk.f32.vlgmr.msra.gmra.mxu2 %vm193_vm9, %v231_v50 }
 0x4ed   :  { %1206 = vmatpush.xpose.msk.msra.mxu2 %vm193_vm9, %v503_v17 }
 0x4f0   :  { %v902_v53 = vpop.permute.xlu1 %901 }
 0x4f4   :  { %1202 = vmatmul.msk.f32.vlgmr.msrb.gmra.mxu2 %vm193_vm9, %v334_v52 }
 0x4f5   :  { %1212 = vmatpush.xpose.msk.msrb.mxu2 %vm193_vm9, %v711_v61  ;;  %v805_v29 = vpop.permute.xlu0 %804 }
 0x4f6   :  { %1216 = vmatmul.msk.f32.vlgmr.msra.gmra.mxu3 %vm193_vm9, %v805_v29 }
 0x4fc   :  { %1207 = vmatmul.msk.f32.vlgmr.msra.gmra.mxu2 %vm193_vm9, %v500_v18 }
 0x4fd   :  { %1218 = vmatpush.xpose.msk.msra.mxu2 %vm193_vm9, %v905_v32 }
 0x504   :  { %1213 = vmatmul.msk.f32.vlgmr.msrb.gmra.mxu2 %vm193_vm9, %v708_v46 }
 0x50c   :  { %1219 = vmatmul.msk.f32.vlgmr.msra.gmra.mxu2 %vm193_vm9, %v902_v53 }
 0x50f   :  { %v1758_v58 = vpop.f32.mrf.mxu3 }
 0x517   :  { %v636_v55 = vpop.f32.mrf.mxu3 }
 0x518   :  { %v639_v56 = vmul.f32 0.35355338, %v636_v55 }
 0x51a   :  { %v640_v57 = vsel %vm1704_vm10, %v639_v56, -1e+30 }
 0x51b   :  { %v641_v59 = vsel %vm193_vm9, %v640_v57, -inf }
 0x51c   :  { %642 = vmax.xlane.f32.xlu0 %v641_v59 }
 0x56f   :  { %v1763_v60 = vpop.f32.mrf.mxu2 }
 0x577   :  { %v1765_v62 = vpop.f32.mrf.mxu2 }
 0x579   :  { %v830_v2 = vpop.f32.mrf.mxu3 }
 0x57a   :  { %v833_v5 = vmul.f32 0.35355338, %v830_v2  ;;  %v986_v2 = vld [vmem:[%s1896_s3 + $0x10] sm:$0xff] }
 0x57c   :  { %v834_v9 = vsel %vm1704_vm10, %v833_v5, -1e+30 }
 0x57d   :  { %v835_v12 = vsel %vm193_vm9, %v834_v9, -inf }
 0x57f   :  { %v525_v54 = vpop.f32.mrf.mxu2 }
 0x580   :  { %v528_v63 = vmul.f32 0.35355338, %v525_v54 }
 0x582   :  { %v529_v3 = vsel %vm1704_vm10, %v528_v63, -1e+30  ;;  %v987_v63 = vld [vmem:[%s1896_s3 + $0x18] sm:$0xff] }
 0x583   :  { %v530_v4 = vsel %vm193_vm9, %v529_v3, -inf  ;;  %1006 = vmatpush.msrb.mxu3 %v987_v63  ;;  %v1138_v63 = vld [vmem:[%s1900_s7 + $0x28] sm:$0xff] }
 0x584   :  { %531 = vmax.xlane.f32.xlu2 %v530_v4 }
 0x585   :  { %1007 = vmatpush.msrb.mxu3 %v986_v2  ;;  %v1137_v2 = vld [vmem:[%s1900_s7 + $0x20] sm:$0xff] }
 0x587   :  { %v733_v6 = vpop.f32.mrf.mxu2 }
 0x588   :  { %v736_v8 = vmul.f32 0.35355338, %v733_v6 }
 0x58a   :  { %v737_v10 = vsel %vm1704_vm10, %v736_v8, -1e+30 }
 0x58b   :  { %v738_v11 = vsel %vm193_vm9, %v737_v10, -inf }
 0x58c   :  { %739 = vmax.xlane.f32.xlu1 %v738_v11  ;;  %836 = vmax.xlane.f32.xlu2 %v835_v12 }
 0x58f   :  { %v927_v14 = vpop.f32.mrf.mxu2  ;;  %v643_v15 = vpop.xlane.xlu0 %642 }
 0x590   :  { %v930_v16 = vmul.f32 0.35355338, %v927_v14  ;;  %v644_v17 = vsub.f32 %v640_v57, %v643_v15 }
 0x592   :  { %v645_v18 = vmul.f32 1.442695, %v644_v17  ;;  %v931_v1 = vsel %vm1704_vm10, %v930_v16, -1e+30 }
 0x593   :  { %v932_v19 = vsel %vm193_vm9, %v931_v1, -inf }
 0x594   :  { %1278 = vpow2.f32 %v645_v18  ;;  %933 = vmax.xlane.f32.xlu0 %v932_v19 }
 0x59a   :  { %v1279_v61 = vpop.eup %1278 }
 0x59b   :  { %v647_v20 = vsel %vm193_vm9, %v1279_v61, 0.0 }
 0x59c   :  { %648 = vadd.xlane.f32.xlu2 %v647_v20 }
 0x5a5   :  { %541 = vrot.lane.b32.xlu1 %v1512_v27, %s1399_s19 }
 0x5a8   :  { %652 = vrot.lane.b32.xlu0 %v1628_v38, %s1413_s12 }
 0x5f7   :  { %v532_v21 = vpop.xlane.xlu2 %531 }
 0x5f8   :  { %v533_v22 = vsub.f32 %v529_v3, %v532_v21  ;;  %v985_v3 = vld [vmem:[%s1896_s3 + $0x8] sm:$0xff] }
 0x5f9   :  { %1008 = vmatpush.msrb.mxu3 %v985_v3  ;;  %v1136_v3 = vld [vmem:[%s1900_s7 + $0x18] sm:$0xff] }
 0x5fa   :  { %v534_v24 = vmul.f32 1.442695, %v533_v22 }
 0x5fc   :  { %1280 = vpow2.f32 %v534_v24 }
 0x5ff   :  { %v740_v36 = vpop.xlane.xlu1 %739  ;;  %v837_v25 = vpop.xlane.xlu2 %836 }
 0x600   :  { %v741_v26 = vsub.f32 %v737_v10, %v740_v36  ;;  %v838_v28 = vsub.f32 %v834_v9, %v837_v25  ;;  %v984_v10 = vld [vmem:[%s1896_s3] sm:$0xff] }
 0x601   :  { %1009 = vmatpush.msrb.mxu3 %v984_v10 }
 0x602   :  { %v1281_v30 = vpop.eup %1280  ;;  %v742_v31 = vmul.f32 1.442695, %v741_v26  ;;  %v839_v33 = vmul.f32 1.442695, %v838_v28 }
 0x603   :  { %v536_v34 = vsel %vm193_vm9, %v1281_v30, 0.0 }
 0x604   :  { %1282 = vpow2.f32 %v742_v31  ;;  %537 = vadd.xlane.f32.xlu1 %v536_v34  ;;  %v1095_v31 = vld [vmem:[#allocation5 + $0x18] sm:$0xff]  ;;  %v1094_v34 = vld [vmem:[#allocation5 + $0x10] sm:$0xff] }
 0x605   :  { %1284 = vpow2.f32 %v839_v33  ;;  %1108 = vmatpush.msrb.mxu2 %v1095_v31  ;;  %v1061_v33 = vld [vmem:[%s1898_s5 + $0x10] sm:$0xff] }
 0x607   :  { %v934_v27 = vpop.xlane.xlu0 %933  ;;  %1109 = vmatpush.msrb.mxu2 %v1094_v34 }
 0x608   :  { %v935_v35 = vsub.f32 %v931_v1, %v934_v27  ;;  %v1093_v27 = vld [vmem:[#allocation5 + $0x8] sm:$0xff] }
 0x609   :  { %1110 = vmatpush.msrb.mxu2 %v1093_v27 }
 0x60a   :  { %v1283_v23 = vpop.eup %1282  ;;  %v936_v37 = vmul.f32 1.442695, %v935_v35  ;;  %v1059_v35 = vld [vmem:[%s1898_s5] sm:$0xff] }
 0x60b   :  { %v1285_v40 = vpop.eup %1284  ;;  %v744_v41 = vsel %vm193_vm9, %v1283_v23, 0.0 }
 0x60c   :  { %1286 = vpow2.f32 %v936_v37  ;;  %745 = vadd.xlane.f32.xlu0 %v744_v41  ;;  %v841_v42 = vsel %vm193_vm9, %v1285_v40, 0.0 }
 0x60d   :  { %842 = vadd.xlane.f32.xlu2 %v841_v42 }
 0x60f   :  { %v649_v43 = vpop.xlane.xlu2 %648 }
 0x610   :  { %1288 = vrcp.f32 %v649_v43 }
 0x612   :  { %v1287_v44 = vpop.eup %1286 }
 0x613   :  { %v938_v45 = vsel %vm193_vm9, %v1287_v44, 0.0 }
 0x615   :  { %939 = vadd.xlane.f32.xlu2 %v938_v45 }
 0x616   :  { %v1289_v7 = vpop.eup %1288 }
 0x617   :  { %v542_v46 = vpop.permute.xlu1 %541  ;;  %v651_v48 = vmul.f32 %v1289_v7, %v1279_v61 }
 0x618   :  { %562 = vmatpush.msrb.mxu1 %v542_v46 }
 0x61a   :  { %v653_v47 = vpop.permute.xlu0 %652 }
 0x61b   :  { %673 = vmatpush.msrb.mxu0 %v653_v47  ;;  %v1259_v47 = vld [vmem:[%s1897_s4] ss:$0 sm:$0xff] }
 0x61c   :  { %1211 = vmatmul.msk.f32.vlgmr.msrb.gmra.mxu0 %vm193_vm9, %v651_v48 }
 0x61d   :  { %846 = vrot.lane.b32.xlu1 %v1628_v38, %s1402_s9 }
 0x620   :  { %943 = vrot.lane.b32.xlu0 %v1628_v38, %s1399_s19 }
 0x625   :  { %568 = vrot.lane.b32.xlu1 %v1765_v62, %s1390_s22 }
 0x628   :  { %572 = vrot.lane.b32.xlu0 %v1758_v58, %s1403_s0 }
 0x62d   :  { %749 = vrot.lane.b32.xlu2 %v1628_v38, %s1411_s2 }
 0x677   :  { %v538_v49 = vpop.xlane.xlu1 %537 }
 0x678   :  { %1290 = vrcp.f32 %v538_v49 }
 0x67e   :  { %v1291_v50 = vpop.eup %1290 }
 0x67f   :  { %v540_v39 = vmul.f32 %v1291_v50, %v1281_v30  ;;  %v746_v29 = vpop.xlane.xlu0 %745 }
 0x680   :  { %v843_v52 = vpop.xlane.xlu2 %842 }
 0x681   :  { %1208 = vmatmul.msk.f32.vlgmr.msrb.gmra.mxu1 %vm193_vm9, %v540_v39  ;;  %1292 = vrcp.f32 %v843_v52 }
 0x682   :  { %1294 = vrcp.f32 %v746_v29 }
 0x687   :  { %v1293_v53 = vpop.eup %1292 }
 0x688   :  { %v940_v32 = vpop.xlane.xlu2 %939  ;;  %v1295_v55 = vpop.eup %1294  ;;  %v845_v56 = vmul.f32 %v1293_v53, %v1285_v40 }
 0x689   :  { %1296 = vrcp.f32 %v940_v32  ;;  %v748_v58 = vmul.f32 %v1295_v55, %v1283_v23  ;;  %v1092_v23 = vld [vmem:[#allocation5] sm:$0xff] }
 0x68a   :  { %1111 = vmatpush.msrb.mxu2 %v1092_v23 }
 0x68f   :  { %v847_v57 = vpop.permute.xlu1 %846  ;;  %v1297_v62 = vpop.eup %1296 }
 0x690   :  { %v750_v59 = vpop.permute.xlu2 %749  ;;  %867 = vmatpush.msra.mxu0 %v847_v57  ;;  %v942_v54 = vmul.f32 %v1297_v62, %v1287_v44 }
 0x691   :  { %770 = vmatpush.msra.mxu1 %v750_v59  ;;  %1217 = vmatmul.msk.f32.vlgmr.msra.gmra.mxu0 %vm193_vm9, %v845_v56 }
 0x692   :  { %1214 = vmatmul.msk.f32.vlgmr.msra.gmra.mxu1 %vm193_vm9, %v748_v58  ;;  %v944_v38 = vpop.permute.xlu0 %943 }
 0x693   :  { %964 = vmatpush.msrb.mxu1 %v944_v38 }
 0x697   :  { %v569_v11 = vpop.permute.xlu1 %568 }
 0x698   :  { %v579_v14 = vsel %vm193_vm9, %v1763_v60, %v569_v11 }
 0x699   :  { %v675_v5 = vpop.f32.mrf.mxu0 }
 0x69a   :  { %1220 = vmatmul.msk.f32.vlgmr.msrb.gmra.mxu1 %vm193_vm9, %v942_v54  ;;  %v573_v12 = vpop.permute.xlu0 %572  ;;  %v1139_v54 = vld [vmem:[%s1900_s7 + $0x30] sm:$0xff] }
 0x69b   :  { %v581_v15 = vsel %vm580_vm11, %v579_v14, %v573_v12 }
 0x6fe   :  { %v564_v4 = vpop.f32.mrf.mxu1 }
 0x6ff   :  { %576 = vrot.lane.b32.xlu2 %v564_v4, %s1412_s11  ;;  %v1135_v4 = vld [vmem:[%s1900_s7 + $0x10] sm:$0xff] }
 0x70e   :  { %v869_v6 = vpop.f32.mrf.mxu0 }
 0x70f   :  { %v772_v8 = vpop.f32.mrf.mxu1  ;;  %974 = vrot.lane.b32.xlu0 %v869_v6, %s1403_s0  ;;  %v1133_v6 = vld [vmem:[%s1900_s7] sm:$0xff] }
 0x710   :  { %970 = vrot.lane.b32.xlu1 %v772_v8, %s1390_s22 }
 0x717   :  { %v966_v9 = vpop.f32.mrf.mxu1 }
 0x718   :  { %978 = vrot.lane.b32.xlu2 %v966_v9, %s1412_s11 }
 0x759   :  { %v577_v16 = vpop.permute.xlu2 %576 }
 0x75a   :  { %v583_v17 = vsel %vm582_vm12, %v581_v15, %v577_v16 }
 0x75b   :  { %1221 = vmatmul.msk.f32.vlgmr.msrb.gmra.mxu3 %vm73_vm0, %v583_v17 }
 0x772   :  { %v979_v61 = vpop.permute.xlu2 %978 }
 0x781   :  { %v975_v18 = vpop.permute.xlu0 %974 }
 0x782   :  { %v971_v1 = vpop.permute.xlu1 %970 }
 0x783   :  { %v981_v19 = vsel %vm193_vm9, %v675_v5, %v971_v1  ;;  %v1134_v5 = vld [vmem:[%s1900_s7 + $0x8] sm:$0xff] }
 0x784   :  { %v982_v20 = vsel %vm580_vm11, %v981_v19, %v975_v18 }
 0x785   :  { %v983_v21 = vsel %vm582_vm12, %v982_v20, %v979_v61 }
 0x786   :  { %1222 = vmatmul.msk.f32.gmra.mxu3 %vm73_vm0, %v983_v21 }
 0x7de   :  { %v1011_v22 = vpop.f32.mrf.mxu3 }
 0x7df   :  { %v1825_v24 = vadd.f32 %v1011_v22, %v1484_v0  ;;  %v1062_v0 = vld [vmem:[%s1898_s5 + $0x18] sm:$0xff] }
 0x7e0   :  { %1081 = vmatpush.msrb.mxu0 %v1062_v0 }
 0x7e1   :  { %v1020_v60 = vmul.f32 %v1825_v24, %v1825_v24 }
 0x7e2   :  { %1082 = vmatpush.msrb.mxu0 %v1061_v33 }
 0x7e3   :  { %v1022_v36 = vsel %vm73_vm0, %v1020_v60, 0.0 }
 0x7e4   :  { %1023 = vadd.xlane.f32.xlu1 %v1022_v36 }
 0x809   :  { %v1014_v25 = vpop.f32.mrf.mxu3 }
 0x80a   :  { %v1831_v26 = vadd.f32 %v1014_v25, %v1576_v51  ;;  %v1060_v51 = vld [vmem:[%s1898_s5 + $0x8] sm:$0xff] }
 0x80b   :  { %1083 = vmatpush.msrb.mxu0 %v1060_v51 }
 0x80c   :  { %v1021_v28 = vmul.f32 %v1831_v26, %v1831_v26 }
 0x80d   :  { %1084 = vmatpush.msrb.mxu0 %v1059_v35 }
 0x80e   :  { %v1025_v30 = vsel %vm73_vm0, %v1021_v28, 0.0 }
 0x80f   :  { %1026 = vadd.xlane.f32.xlu0 %v1025_v30 }
 0x857   :  { %v1024_v37 = vpop.xlane.xlu1 %1023 }
 0x858   :  { %v1028_v40 = vmul.f32 %v1024_v37, %v1501_v13 }
 0x85a   :  { %v1030_v41 = vadd.f32 1e-06, %v1028_v40 }
 0x85c   :  { %1298 = vrsqrt.f32 %v1030_v41  ;;  %vm1038_vm14 = vweird.f32 %v1030_v41 }
 0x862   :  { %v1299_v42 = vpop.eup %1298 }
 0x863   :  { %v1033_v43 = vmul.f32 %v1299_v42, %v1030_v41  ;;  %vm1039_vm13 = vweird.f32 %v1299_v42 }
 0x864   :  { %vm1040_vm15 = vmor %vm1038_vm14, %vm1039_vm13 }
 0x865   :  { %v1034_v44 = vmul.f32 %v1299_v42, %v1033_v43 }
 0x867   :  { %v1035_v45 = vmul.f32 0.5, %v1034_v44 }
 0x869   :  { %v1036_v7 = vsub.f32 1.5, %v1035_v45 }
 0x86b   :  { %v1037_v46 = vmul.f32 %v1299_v42, %v1036_v7 }
 0x86d   :  { %v1041_v48 = vsel %vm1040_vm15, %v1299_v42, %v1037_v46 }
 0x86e   :  { %v1052_v49 = vmul.f32 %v1041_v48, %v1825_v24 }
 0x870   :  { %v1057_v50 = vmul.f32 %v1259_v47, %v1052_v49 }
 0x872   :  { %1223 = vmatmul.msk.f32.vlgmr.msrb.gmra.mxu0 %vm73_vm0, %v1057_v50  ;;  %1225 = vmatmul.msk.f32.vlgmr.msrb.gmra.mxu2 %vm73_vm0, %v1057_v50 }
 0x882   :  { %v1027_v39 = vpop.xlane.xlu0 %1026 }
 0x883   :  { %v1029_v52 = vmul.f32 %v1027_v39, %v1501_v13  ;;  %v1140_v13 = vld [vmem:[%s1900_s7 + $0x38] sm:$0xff]  ;;  %s1416_s7 = smov [#allocation7]  }
 0x884   :  { %1156 = vmatpush.msra.mxu1 %v1140_v13  ;;  %s1179_s23 = sshll.u32 %s1416_s7, 4  ;;  %s1180_s23 = int_to_ptr.vmem [resolvable:$true] %s1179_s23 }
 0x885   :  { %v1031_v29 = vadd.f32 1e-06, %v1029_v52 }
 0x886   :  { %1157 = vmatpush.msra.mxu1 %v1139_v54 }
 0x887   :  { %1300 = vrsqrt.f32 %v1031_v29  ;;  %vm1048_vm2 = vweird.f32 %v1031_v29 }
 0x888   :  { %1158 = vmatpush.msra.mxu1 %v1138_v63 }
 0x88a   :  { %1159 = vmatpush.msra.mxu1 %v1137_v2 }
 0x88c   :  { %1160 = vmatpush.msra.mxu1 %v1136_v3 }
 0x88d   :  { %v1301_v32 = vpop.eup %1300 }
 0x88e   :  { %v1043_v53 = vmul.f32 %v1301_v32, %v1031_v29  ;;  %vm1049_vm1 = vweird.f32 %v1301_v32  ;;  %1161 = vmatpush.msra.mxu1 %v1135_v4 }
 0x88f   :  { %vm1050_vm3 = vmor %vm1048_vm2, %vm1049_vm1 }
 0x890   :  { %v1044_v55 = vmul.f32 %v1301_v32, %v1043_v53  ;;  %1162 = vmatpush.msra.mxu1 %v1134_v5 }
 0x892   :  { %v1045_v56 = vmul.f32 0.5, %v1044_v55  ;;  %1163 = vmatpush.msra.mxu1 %v1133_v6 }
 0x894   :  { %v1046_v57 = vsub.f32 1.5, %v1045_v56 }
 0x896   :  { %v1047_v58 = vmul.f32 %v1301_v32, %v1046_v57 }
 0x898   :  { %v1051_v59 = vsel %vm1050_vm3, %v1301_v32, %v1047_v58 }
 0x899   :  { %v1053_v38 = vmul.f32 %v1051_v59, %v1831_v26 }
 0x89b   :  { %v1058_v62 = vmul.f32 %v1259_v47, %v1053_v38 }
 0x89d   :  { %1224 = vmatmul.msk.f32.gmra.mxu0 %vm73_vm0, %v1058_v62  ;;  %1226 = vmatmul.msk.f32.gmra.mxu2 %vm73_vm0, %v1058_v62 }
 0x8ef   :  { %v1086_v8 = vpop.f32.mrf.mxu0 }
 0x8f0   :  { %v1119_v9 = vsub.f32 0.0, %v1086_v8 }
 0x8f2   :  { %v1121_v10 = vmul.f32 1.442695, %v1119_v9 }
 0x8f4   :  { %1302 = vpow2.f32 %v1121_v10 }
 0x8f5   :  { %v1113_v16 = vpop.f32.mrf.mxu2 }
 0x8fa   :  { %v1303_v11 = vpop.eup %1302 }
 0x8fb   :  { %v1125_v12 = vadd.f32 1.0, %v1303_v11 }
 0x8fd   :  { %1304 = vrcp.f32 %v1125_v12 }
 0x903   :  { %v1305_v14 = vpop.eup %1304 }
 0x904   :  { %v1129_v15 = vmul.f32 %v1305_v14, %v1086_v8 }
 0x906   :  { %v1131_v17 = vmul.f32 %v1129_v15, %v1113_v16 }
 0x908   :  { %1227 = vmatmul.msk.f32.vlgmr.msra.gmra.mxu1 %vm1141_vm4, %v1131_v17 }
 0x91a   :  { %v1089_v18 = vpop.f32.mrf.mxu0 }
 0x91b   :  { %v1120_v1 = vsub.f32 0.0, %v1089_v18 }
 0x91d   :  { %v1123_v19 = vmul.f32 1.442695, %v1120_v1 }
 0x91f   :  { %1306 = vpow2.f32 %v1123_v19 }
 0x920   :  { %v1116_v60 = vpop.f32.mrf.mxu2 }
 0x925   :  { %v1307_v61 = vpop.eup %1306 }
 0x926   :  { %v1126_v20 = vadd.f32 1.0, %v1307_v61 }
 0x928   :  { %1308 = vrcp.f32 %v1126_v20 }
 0x92e   :  { %v1309_v21 = vpop.eup %1308 }
 0x92f   :  { %v1130_v22 = vmul.f32 %v1309_v21, %v1089_v18 }
 0x931   :  { %v1132_v36 = vmul.f32 %v1130_v22, %v1116_v60 }
 0x933   :  { %1228 = vmatmul.msk.f32.gmra.mxu1 %vm1141_vm4, %v1132_v36 }
 0x985   :  { %v1165_v25 = vpop.f32.mrf.mxu1 }
 0x986   :  { %v1171_v28 = vadd.f32 %v1165_v25, %v1825_v24 }
 0x988   :  { %1173 = vst.msk [vmem:[#allocation7] sm:$0xff] %vm73_vm0, %v1171_v28 }
 0x9b0   :  { %v1168_v30 = vpop.f32.mrf.mxu1 }
 0x9b1   :  { %v1172_v0 = vadd.f32 %v1168_v30, %v1831_v26 }
 0x9b3   :  { %1174 = vst.msk [vmem:[#allocation7 + $0x8] sm:$0xff] %vm73_vm0, %v1172_v0 }
 0x9b4   :  { %1187 = dma.vmem_to_hbm [thread:$0]  %s1180_s23, 256, %s1182_s24, [#allocation4], %s1389_s21, %s1389_s21, %s1390_s22  }
 0x9b5   :  { %1386 = dma.done.wait [#allocation4], 256  }
 0x9b6   :  { %1387 = vsyncadd [#allocation4], 4294967040 }
 0x9b7   :  { %1192 = vsyncpa [#allocation3], 1 }
 0x9b8   :  { %1193 = vsyncpa [#allocation6], 1 }
 0x9b9   :  { %1194 = vsyncpa [#allocation4], 1 }

</bundles_post_ra>
